<compile_context>
chip_gen: v7x
topology: tpu7x:2x2x1
jax: 0.10.0
libtpu: 0.0.40
codegen_flags: <defaults>
</compile_context>

<pallas_src>
import jax
import jax.numpy as jnp
from jax.experimental import pallas as pl
from jax.experimental.pallas import tpu as pltpu

# ----------------------------- model config ---------------------------------
IN_SIZE = 2        # velocity (x, y)
EMB_DIM = 16
HIDDEN = 32
OUT_SIZE = 2       # must equal IN_SIZE (t_pred = dec + v_last)
DT = 0.4

B = 2              # batch
T_OBS = 8          # observed timesteps
T_PRED = 8         # predicted timesteps


# ------------------------------ fused kernel --------------------------------
def _fused_kernel(obs_ref, abslast_ref, tgt_ref,
                  embaug_ref, wih12_ref, b12_ref,
                  whh1_ref, whh2_ref, wdecpad_ref, bdec_ref,
                  loss_ref, wfull_ref):
    H = HIDDEN
    G = 4 * H
    Bk = abslast_ref.shape[0]
    T_obs = obs_ref.shape[0] // Bk
    T_pred = tgt_ref.shape[0] // Bk

    # ---------------- prologue: embedding fold (ONE MXU dot) ----------------
    # [w_emb; b_emb] (IN+1, E)  @  [w_ih1 | w_ih2] (E, 8H)
    fold = jnp.dot(embaug_ref[...], wih12_ref[...],
                   preferred_element_type=jnp.float32)            # (IN+1, 8H)
    w_comb = fold[0:IN_SIZE, :]                                   # (IN, 8H)
    b_comb = fold[IN_SIZE:IN_SIZE + 1, :] + b12_ref[...]          # (1, 8H)
    w_comb1 = w_comb[:, 0:G]                                      # (IN, 4H)
    w_comb2 = w_comb[:, G:2 * G]                                  # (IN, 4H)
    b_comb1 = b_comb[:, 0:G]                                      # (1, 4H)
    b_comb2 = b_comb[:, G:2 * G]                                  # (1, 4H)

    w_hh1 = whh1_ref[...]                                         # (H, 4H)
    w_dec_pad = wdecpad_ref[...]                                  # (H, 4H), cols >= OUT are 0
    b_dec = bdec_ref[...]                                         # (1, OUT)

    # ----------- decoder fused RHS:  W_full = [w_hh2 | W_dc | w_dec_pad] ----
    # W_dc = w_dec @ w_comb2 folds the decoder-output -> next-input-gate path
    # (K = OUT = 2, so two one-time broadcast FMAs instead of a tiny dot).
    W_dc = (w_dec_pad[:, 0:1] * w_comb2[0:1, :]
            + w_dec_pad[:, 1:2] * w_comb2[1:2, :])                # (H, 4H)
    wfull_ref[:, 0:G] = whh2_ref[...]
    wfull_ref[:, G:2 * G] = W_dc
    wfull_ref[:, 2 * G:3 * G] = w_dec_pad
    w_full = wfull_ref[...]                                       # (H, 12H)

    # constant bias entering the input-gate recurrence: b_dec @ w_comb2
    bdec_w2 = (bdec_ref[:, 0:1] * w_comb2[0:1, :]
               + bdec_ref[:, 1:2] * w_comb2[1:2, :])              # (1, 4H)

    # -------- hoisted broadcasts & single-EUP activation constants ----------
    lane = jax.lax.broadcasted_iota(jnp.int32, (1, G), 1)
    is_g = jnp.logical_and(lane >= 2 * H, lane < 3 * H)           # g-gate lanes
    pre_s = jnp.where(is_g, jnp.float32(1.0), jnp.float32(0.5))   # tanh arg scale
    post_a = jnp.where(is_g, jnp.float32(0.0), jnp.float32(0.5))  # post-add
    pre_s_b = jnp.broadcast_to(pre_s, (Bk, G))
    post_a_b = jnp.broadcast_to(post_a, (Bk, G))
    b_dec_b = jnp.broadcast_to(b_dec, (Bk, OUT_SIZE))
    bdecw2_b = jnp.broadcast_to(bdec_w2, (Bk, G))
    b_comb2_b = jnp.broadcast_to(b_comb2, (Bk, G))

    def activate(gates, c):
        # i,f,o: sigmoid(x) = 0.5*tanh(0.5x)+0.5 ; g: tanh(x)  -> ONE EUP pass
        t = jnp.tanh(gates * pre_s_b)
        act = t * pre_s_b + post_a_b
        i_g = act[:, 0 * H:1 * H]
        f_g = act[:, 1 * H:2 * H]
        g_g = act[:, 2 * H:3 * H]
        o_g = act[:, 3 * H:4 * H]
        c_new = f_g * c + i_g * g_g
        h_new = o_g * jnp.tanh(c_new)
        return h_new, c_new

    # ------------- encoder input gates hoisted out of the loop --------------
    obs = obs_ref[...]                                            # (T_obs*B, IN), time-major
    enc_in = (obs[:, 0:1] * w_comb1[0:1, :]
              + obs[:, 1:2] * w_comb1[1:2, :]
              + b_comb1)                                          # (T_obs*B, 4H)

    # --------------------------- encoder recurrence -------------------------
    h = jnp.zeros((Bk, H), jnp.float32)
    c = jnp.zeros((Bk, H), jnp.float32)
    for t in range(T_obs):                                        # static unroll
        gates = enc_in[t * Bk:(t + 1) * Bk, :] + jnp.dot(
            h, w_hh1, preferred_element_type=jnp.float32)         # ONE dot / step
        h, c = activate(gates, c)

    # ----------------------- decoder recurrence + loss ----------------------
    v = obs[(T_obs - 1) * Bk:T_obs * Bk, :]                       # last observed vel (B, IN)
    abs_last = abslast_ref[...]                                   # (B, OUT)
    tgt = tgt_ref[...]                                            # (T_pred*B, OUT), time-major

    # initial input gates from v0 (K = 2 -> two one-time broadcast FMAs)
    in_g = (v[:, 0:1] * w_comb2[0:1, :]
            + v[:, 1:2] * w_comb2[1:2, :] + b_comb2_b)            # (B, 4H)
    comb = jnp.dot(h, w_full, preferred_element_type=jnp.float32) # prologue dot
    gates = in_g + comb[:, 0:G]

    cum = jnp.zeros((Bk, OUT_SIZE), jnp.float32)
    sq = jnp.zeros((Bk, OUT_SIZE), jnp.float32)
    dt = jnp.float32(DT)
    for i in range(T_pred):                                       # static unroll
        h, c = activate(gates, c)
        comb = jnp.dot(h, w_full,
                       preferred_element_type=jnp.float32)        # ONE fused dot / step
        dec = comb[:, 2 * G:2 * G + OUT_SIZE] + b_dec_b           # decoder linear
        v = v + dec                                               # t_pred = dec + v_last
        cum = cum + v                                             # cat(...).sum(1)
        pred_abs = abs_last + dt * cum
        diff = tgt[i * Bk:(i + 1) * Bk, :] - pred_abs
        sq = sq + diff * diff
        in_g = in_g + comb[:, G:2 * G] + bdecw2_b                 # next input gates
        gates = in_g + comb[:, 0:G]                               # next pre-activations

    # sum_i mean(diff_i^2) == sum(sq) / (B*OUT)   (mean is linear)
    row = jnp.sum(sq, axis=1, keepdims=True)                      # (B, 1)
    tot = jnp.sum(row, axis=0, keepdims=True)                     # (1, 1)
    loss_ref[...] = tot * jnp.float32(1.0 / (Bk * OUT_SIZE))


# ------------------------------- full forward -------------------------------
@jax.jit
def forward(params, obs_vels, target_vels, obs_abs, target_abs):
    """Reproduces lstm_encdec.forward(..., teacher_forcing=False)."""
    del target_vels  # only used when teacher_forcing=True
    Bk, T_obs, _ = obs_vels.shape
    T_pred = target_abs.shape[1]
    G = 4 * HIDDEN

    # Pure-layout prep (zero flops): parameter concat/pad + time-major flatten.
    emb_aug = jnp.concatenate([params["w_emb"], params["b_emb"]], axis=0)   # (IN+1, E)
    w_ih12 = jnp.concatenate([params["w_ih1"], params["w_ih2"]], axis=1)    # (E, 8H)
    b12 = jnp.concatenate([params["b1"], params["b2"]], axis=1)             # (1, 8H)
    w_dec_pad = jnp.pad(params["w_dec"], ((0, 0), (0, G - OUT_SIZE)))       # (H, 4H)

    obs_flat = jnp.transpose(obs_vels, (1, 0, 2)).reshape(T_obs * Bk, IN_SIZE)
    tgt_flat = jnp.transpose(target_abs, (1, 0, 2)).reshape(T_pred * Bk, OUT_SIZE)
    abs_last = obs_abs[:, -1, :]

    ins = (obs_flat, abs_last, tgt_flat,
           emb_aug, w_ih12, b12,
           params["w_hh1"], params["w_hh2"], w_dec_pad, params["b_dec"])

    flops = (2 * (IN_SIZE + 1) * EMB_DIM * 2 * G                 # prologue fold
             + T_obs * 2 * Bk * HIDDEN * G                       # encoder hh dots
             + (T_pred + 1) * 2 * Bk * HIDDEN * 3 * G)           # decoder fused dots
    transcendentals = (T_obs + T_pred) * Bk * (G + HIDDEN)
    bytes_accessed = 4 * (sum(int(a.size) for a in ins) + 1)

    loss = pl.pallas_call(
        _fused_kernel,
        out_shape=jax.ShapeDtypeStruct((1, 1), jnp.float32),
        in_specs=[pl.BlockSpec(memory_space=pltpu.MemorySpace.VMEM)
                  for _ in ins],
        out_specs=pl.BlockSpec(memory_space=pltpu.MemorySpace.VMEM),
        scratch_shapes=[pltpu.VMEM((HIDDEN, 3 * G), jnp.float32)],
        cost_estimate=pl.CostEstimate(flops=flops,
                                      transcendentals=transcendentals,
                                      bytes_accessed=bytes_accessed),
    )(*ins)
    return loss[0, 0]


# -------------------------- pure-JAX reference ------------------------------
def forward_ref(params, obs_vels, target_vels, obs_abs, target_abs):
    """Unfused reference that mirrors the PyTorch computation order."""
    H = HIDDEN

    def cell(x, h, c, w_ih, w_hh, b):
        emb = x @ params["w_emb"] + params["b_emb"]
        gates = emb @ w_ih + h @ w_hh + b
        i = jax.nn.sigmoid(gates[:, 0 * H:1 * H])
        f = jax.nn.sigmoid(gates[:, 1 * H:2 * H])
        g = jnp.tanh(gates[:, 2 * H:3 * H])
        o = jax.nn.sigmoid(gates[:, 3 * H:4 * H])
        c = f * c + i * g
        h = o * jnp.tanh(c)
        return h, c

    Bk = obs_vels.shape[0]
    h = jnp.zeros((Bk, H), jnp.float32)
    c = jnp.zeros((Bk, H), jnp.float32)
    for t in range(obs_vels.shape[1]):
        h, c = cell(obs_vels[:, t, :], h, c,
                    params["w_ih1"], params["w_hh1"], params["b1"])
    v = obs_vels[:, -1, :]
    abs_last = obs_abs[:, -1, :]
    cum = jnp.zeros((Bk, OUT_SIZE), jnp.float32)
    loss = jnp.float32(0.0)
    for i in range(target_abs.shape[1]):
        h, c = cell(v, h, c, params["w_ih2"], params["w_hh2"], params["b2"])
        dec = h @ params["w_dec"] + params["b_dec"]
        v = dec + v
        cum = cum + v
        pred_abs = abs_last + DT * cum
        loss = loss + jnp.mean((target_abs[:, i, :] - pred_abs) ** 2)
    return loss


# ------------------------------- param init ---------------------------------
def init_params(key):
    ks = jax.random.split(key, 10)

    def u(k, shape, scale=0.1):
        return jax.random.uniform(k, shape, jnp.float32, -1.0, 1.0) * scale

    return {
        # embedding: Linear(in_size, embedding_dim), stored as (in, out)
        "w_emb": u(ks[0], (IN_SIZE, EMB_DIM)),
        "b_emb": u(ks[1], (1, EMB_DIM)),
        # lstm1 (encoder): W_ih^T (E, 4H), W_hh^T (H, 4H), bias_ih + bias_hh
        "w_ih1": u(ks[2], (EMB_DIM, 4 * HIDDEN)),
        "w_hh1": u(ks[3], (HIDDEN, 4 * HIDDEN)),
        "b1":   u(ks[4], (1, 4 * HIDDEN)),
        # lstm2 (decoder)
        "w_ih2": u(ks[5], (EMB_DIM, 4 * HIDDEN)),
        "w_hh2": u(ks[6], (HIDDEN, 4 * HIDDEN)),
        "b2":   u(ks[7], (1, 4 * HIDDEN)),
        # decoder: Linear(hidden_dim, output_size)
        "w_dec": u(ks[8], (HIDDEN, OUT_SIZE)),
        "b_dec": u(ks[9], (1, OUT_SIZE)),
    }


if __name__ == "__main__":
    key = jax.random.PRNGKey(0)
    k_in, k_tv, k_oa, k_ta = jax.random.split(key, 4)

    obs_vels = jax.random.normal(k_in, (B, T_OBS, IN_SIZE), jnp.float32)
    target_vels = jax.random.normal(k_tv, (B, T_PRED, IN_SIZE), jnp.float32)
    obs_abs = jax.random.normal(k_oa, (B, T_OBS, IN_SIZE), jnp.float32)
    target_abs = jax.random.normal(k_ta, (B, T_PRED, IN_SIZE), jnp.float32)

    params = init_params(jax.random.PRNGKey(42))

    loss = forward(params, obs_vels, target_vels, obs_abs, target_abs)
    jax.block_until_ready(loss)
    assert jnp.isfinite(loss)

    loss_ref = forward_ref(params, obs_vels, target_vels, obs_abs, target_abs)
    assert jnp.allclose(loss, loss_ref, rtol=1e-3, atol=1e-3), (loss, loss_ref)

    print("KERNEL_OK")
</pallas_src>

<mosaic_0001>
module attributes {stable_mosaic.version = 11 : i64} {
  func.func @_fused_kernel(%arg0: memref<16x2xf32, #tpu.memory_space<vmem>>, %arg1: memref<2x2xf32, #tpu.memory_space<vmem>>, %arg2: memref<16x2xf32, #tpu.memory_space<vmem>>, %arg3: memref<3x16xf32, #tpu.memory_space<vmem>>, %arg4: memref<16x256xf32, #tpu.memory_space<vmem>>, %arg5: memref<1x256xf32, #tpu.memory_space<vmem>>, %arg6: memref<32x128xf32, #tpu.memory_space<vmem>>, %arg7: memref<32x128xf32, #tpu.memory_space<vmem>>, %arg8: memref<32x128xf32, #tpu.memory_space<vmem>>, %arg9: memref<1x2xf32, #tpu.memory_space<vmem>>, %arg10: memref<1x1xf32, #tpu.memory_space<vmem>>, %arg11: memref<32x384xf32, #tpu.memory_space<vmem>>) attributes {dimension_semantics = [], scalar_prefetch = 0 : i64, scratch_operands = 1 : i64, tpu.core_type = #tpu.core_type<tc>} {
    %c0 = arith.constant 0 : index
    %c0_0 = arith.constant 0 : index
    %0 = vector.load %arg3[%c0, %c0_0] : memref<3x16xf32, #tpu.memory_space<vmem>>, vector<3x16xf32>
    %c0_1 = arith.constant 0 : index
    %c0_2 = arith.constant 0 : index
    %1 = vector.load %arg4[%c0_1, %c0_2] : memref<16x256xf32, #tpu.memory_space<vmem>>, vector<16x256xf32>
    %cst = arith.constant dense<0.000000e+00> : vector<3x256xf32>
    %2 = tpu.matmul %0, %1, %cst {dimension_numbers = #tpu.dot_dimension_numbers<[1], [0], [0], [1], [0, 0, 1, 1], [], []>} : vector<3x16xf32>, vector<16x256xf32>, vector<3x256xf32> -> vector<3x256xf32>
    %3 = vector.extract_strided_slice %2 {offsets = [0, 0], sizes = [2, 256], strides = [1, 1]} : vector<3x256xf32> to vector<2x256xf32>
    %4 = vector.extract_strided_slice %2 {offsets = [2, 0], sizes = [1, 256], strides = [1, 1]} : vector<3x256xf32> to vector<1x256xf32>
    %c0_3 = arith.constant 0 : index
    %c0_4 = arith.constant 0 : index
    %5 = vector.load %arg5[%c0_3, %c0_4] : memref<1x256xf32, #tpu.memory_space<vmem>>, vector<1x256xf32>
    %6 = arith.addf %4, %5 : vector<1x256xf32>
    %7 = vector.extract_strided_slice %3 {offsets = [0, 0], sizes = [2, 128], strides = [1, 1]} : vector<2x256xf32> to vector<2x128xf32>
    %8 = vector.extract_strided_slice %3 {offsets = [0, 128], sizes = [2, 128], strides = [1, 1]} : vector<2x256xf32> to vector<2x128xf32>
    %9 = vector.extract_strided_slice %6 {offsets = [0, 0], sizes = [1, 128], strides = [1, 1]} : vector<1x256xf32> to vector<1x128xf32>
    %10 = vector.extract_strided_slice %6 {offsets = [0, 128], sizes = [1, 128], strides = [1, 1]} : vector<1x256xf32> to vector<1x128xf32>
    %c0_5 = arith.constant 0 : index
    %c0_6 = arith.constant 0 : index
    %11 = vector.load %arg6[%c0_5, %c0_6] : memref<32x128xf32, #tpu.memory_space<vmem>>, vector<32x128xf32>
    %c0_7 = arith.constant 0 : index
    %c0_8 = arith.constant 0 : index
    %12 = vector.load %arg8[%c0_7, %c0_8] : memref<32x128xf32, #tpu.memory_space<vmem>>, vector<32x128xf32>
    %c0_9 = arith.constant 0 : index
    %c0_10 = arith.constant 0 : index
    %13 = vector.load %arg9[%c0_9, %c0_10] : memref<1x2xf32, #tpu.memory_space<vmem>>, vector<1x2xf32>
    %14 = vector.extract_strided_slice %12 {offsets = [0, 0], sizes = [32, 1], strides = [1, 1]} : vector<32x128xf32> to vector<32x1xf32>
    %15 = vector.extract_strided_slice %8 {offsets = [0, 0], sizes = [1, 128], strides = [1, 1]} : vector<2x128xf32> to vector<1x128xf32>
    %16 = vector.broadcast %14 : vector<32x1xf32> to vector<32x128xf32>
    %17 = vector.broadcast %15 : vector<1x128xf32> to vector<32x128xf32>
    %18 = arith.mulf %16, %17 : vector<32x128xf32>
    %19 = vector.extract_strided_slice %12 {offsets = [0, 1], sizes = [32, 1], strides = [1, 1]} : vector<32x128xf32> to vector<32x1xf32>
    %20 = vector.extract_strided_slice %8 {offsets = [1, 0], sizes = [1, 128], strides = [1, 1]} : vector<2x128xf32> to vector<1x128xf32>
    %21 = vector.broadcast %19 : vector<32x1xf32> to vector<32x128xf32>
    %22 = vector.broadcast %20 : vector<1x128xf32> to vector<32x128xf32>
    %23 = arith.mulf %21, %22 : vector<32x128xf32>
    %24 = arith.addf %18, %23 : vector<32x128xf32>
    %c0_11 = arith.constant 0 : index
    %c0_12 = arith.constant 0 : index
    %25 = vector.load %arg7[%c0_11, %c0_12] : memref<32x128xf32, #tpu.memory_space<vmem>>, vector<32x128xf32>
    %c0_13 = arith.constant 0 : index
    %c0_14 = arith.constant 0 : index
    %26 = vector.load %arg11[%c0_13, %c0_14] : memref<32x384xf32, #tpu.memory_space<vmem>>, vector<32x128xf32>
    tpu.vector_store %arg11[%c0_13, %c0_14], %25 {strides = array<i32>} : memref<32x384xf32, #tpu.memory_space<vmem>>, vector<32x128xf32>,
    %c0_15 = arith.constant 0 : index
    %c128 = arith.constant 128 : index
    %27 = vector.load %arg11[%c0_15, %c128] : memref<32x384xf32, #tpu.memory_space<vmem>>, vector<32x128xf32>
    tpu.vector_store %arg11[%c0_15, %c128], %24 {strides = array<i32>} : memref<32x384xf32, #tpu.memory_space<vmem>>, vector<32x128xf32>,
    %c0_16 = arith.constant 0 : index
    %c256 = arith.constant 256 : index
    %28 = vector.load %arg11[%c0_16, %c256] : memref<32x384xf32, #tpu.memory_space<vmem>>, vector<32x128xf32>
    tpu.vector_store %arg11[%c0_16, %c256], %12 {strides = array<i32>} : memref<32x384xf32, #tpu.memory_space<vmem>>, vector<32x128xf32>,
    %c0_17 = arith.constant 0 : index
    %c0_18 = arith.constant 0 : index
    %29 = vector.load %arg11[%c0_17, %c0_18] : memref<32x384xf32, #tpu.memory_space<vmem>>, vector<32x384xf32>
    %c0_19 = arith.constant 0 : index
    %c0_20 = arith.constant 0 : index
    %30 = vector.load %arg9[%c0_19, %c0_20] : memref<1x2xf32, #tpu.memory_space<vmem>>, vector<1x1xf32>
    %31 = vector.extract_strided_slice %8 {offsets = [0, 0], sizes = [1, 128], strides = [1, 1]} : vector<2x128xf32> to vector<1x128xf32>
    %32 = vector.broadcast %30 : vector<1x1xf32> to vector<1x128xf32>
    %33 = arith.mulf %32, %31 : vector<1x128xf32>
    %c0_21 = arith.constant 0 : index
    %c1 = arith.constant 1 : index
    %34 = vector.load %arg9[%c0_21, %c1] : memref<1x2xf32, #tpu.memory_space<vmem>>, vector<1x1xf32>
    %35 = vector.extract_strided_slice %8 {offsets = [1, 0], sizes = [1, 128], strides = [1, 1]} : vector<2x128xf32> to vector<1x128xf32>
    %36 = vector.broadcast %34 : vector<1x1xf32> to vector<1x128xf32>
    %37 = arith.mulf %36, %35 : vector<1x128xf32>
    %38 = arith.addf %33, %37 : vector<1x128xf32>
    %39 = tpu.iota {dimensions = array<i32: 1>} : vector<1x128xi32>
    %c64_i32 = arith.constant 64 : i32
    %40 = vector.broadcast %c64_i32 : i32 to vector<1x128xi32>
    %41 = arith.cmpi sge, %39, %40 : vector<1x128xi32>
    %c96_i32 = arith.constant 96 : i32
    %42 = vector.broadcast %c96_i32 : i32 to vector<1x128xi32>
    %43 = arith.cmpi slt, %39, %42 : vector<1x128xi32>
    %44 = arith.andi %41, %43 : vector<1x128xi1>
    %cst_22 = arith.constant 1.000000e+00 : f32
    %cst_23 = arith.constant 5.000000e-01 : f32
    %45 = vector.broadcast %cst_22 : f32 to vector<1x128xf32>
    %46 = vector.broadcast %cst_23 : f32 to vector<1x128xf32>
    %47 = arith.select %44, %45, %46 : vector<1x128xi1>, vector<1x128xf32>
    %cst_24 = arith.constant 0.000000e+00 : f32
    %cst_25 = arith.constant 5.000000e-01 : f32
    %48 = vector.broadcast %cst_24 : f32 to vector<1x128xf32>
    %49 = vector.broadcast %cst_25 : f32 to vector<1x128xf32>
    %50 = arith.select %44, %48, %49 : vector<1x128xi1>, vector<1x128xf32>
    %51 = vector.shape_cast %47 : vector<1x128xf32> to vector<1x128xf32>
    %52 = vector.broadcast %51 : vector<1x128xf32> to vector<2x128xf32>
    %53 = vector.shape_cast %50 : vector<1x128xf32> to vector<1x128xf32>
    %54 = vector.broadcast %53 : vector<1x128xf32> to vector<2x128xf32>
    %55 = vector.shape_cast %13 : vector<1x2xf32> to vector<1x2xf32>
    %56 = vector.broadcast %55 : vector<1x2xf32> to vector<2x2xf32>
    %57 = vector.shape_cast %38 : vector<1x128xf32> to vector<1x128xf32>
    %58 = vector.broadcast %57 : vector<1x128xf32> to vector<2x128xf32>
    %59 = vector.shape_cast %10 : vector<1x128xf32> to vector<1x128xf32>
    %60 = vector.broadcast %59 : vector<1x128xf32> to vector<2x128xf32>
    %c0_26 = arith.constant 0 : index
    %c0_27 = arith.constant 0 : index
    %61 = vector.load %arg0[%c0_26, %c0_27] : memref<16x2xf32, #tpu.memory_space<vmem>>, vector<16x2xf32>
    %62 = vector.extract_strided_slice %61 {offsets = [0, 0], sizes = [16, 1], strides = [1, 1]} : vector<16x2xf32> to vector<16x1xf32>
    %63 = vector.extract_strided_slice %7 {offsets = [0, 0], sizes = [1, 128], strides = [1, 1]} : vector<2x128xf32> to vector<1x128xf32>
    %64 = vector.broadcast %62 : vector<16x1xf32> to vector<16x128xf32>
    %65 = vector.broadcast %63 : vector<1x128xf32> to vector<16x128xf32>
    %66 = arith.mulf %64, %65 : vector<16x128xf32>
    %67 = vector.extract_strided_slice %61 {offsets = [0, 1], sizes = [16, 1], strides = [1, 1]} : vector<16x2xf32> to vector<16x1xf32>
    %68 = vector.extract_strided_slice %7 {offsets = [1, 0], sizes = [1, 128], strides = [1, 1]} : vector<2x128xf32> to vector<1x128xf32>
    %69 = vector.broadcast %67 : vector<16x1xf32> to vector<16x128xf32>
    %70 = vector.broadcast %68 : vector<1x128xf32> to vector<16x128xf32>
    %71 = arith.mulf %69, %70 : vector<16x128xf32>
    %72 = arith.addf %66, %71 : vector<16x128xf32>
    %73 = vector.broadcast %9 : vector<1x128xf32> to vector<16x128xf32>
    %74 = arith.addf %72, %73 : vector<16x128xf32>
    %cst_28 = arith.constant 0.000000e+00 : f32
    %75 = vector.broadcast %cst_28 : f32 to vector<2x32xf32>
    %cst_29 = arith.constant 0.000000e+00 : f32
    %76 = vector.broadcast %cst_29 : f32 to vector<2x32xf32>
    %77 = vector.extract_strided_slice %74 {offsets = [0, 0], sizes = [2, 128], strides = [1, 1]} : vector<16x128xf32> to vector<2x128xf32>
    %cst_30 = arith.constant dense<0.000000e+00> : vector<2x128xf32>
    %78 = tpu.matmul %75, %11, %cst_30 {dimension_numbers = #tpu.dot_dimension_numbers<[1], [0], [0], [1], [0, 0, 1, 1], [], []>} : vector<2x32xf32>, vector<32x128xf32>, vector<2x128xf32> -> vector<2x128xf32>
    %79 = arith.addf %77, %78 : vector<2x128xf32>
    %80 = arith.mulf %79, %52 : vector<2x128xf32>
    %81 = math.tanh %80 : vector<2x128xf32>
    %82 = arith.mulf %81, %52 : vector<2x128xf32>
    %83 = arith.addf %82, %54 : vector<2x128xf32>
    %84 = vector.extract_strided_slice %83 {offsets = [0, 0], sizes = [2, 32], strides = [1, 1]} : vector<2x128xf32> to vector<2x32xf32>
    %85 = vector.extract_strided_slice %83 {offsets = [0, 32], sizes = [2, 32], strides = [1, 1]} : vector<2x128xf32> to vector<2x32xf32>
    %86 = vector.extract_strided_slice %83 {offsets = [0, 64], sizes = [2, 32], strides = [1, 1]} : vector<2x128xf32> to vector<2x32xf32>
    %87 = vector.extract_strided_slice %83 {offsets = [0, 96], sizes = [2, 32], strides = [1, 1]} : vector<2x128xf32> to vector<2x32xf32>
    %88 = arith.mulf %85, %76 : vector<2x32xf32>
    %89 = arith.mulf %84, %86 : vector<2x32xf32>
    %90 = arith.addf %88, %89 : vector<2x32xf32>
    %91 = math.tanh %90 : vector<2x32xf32>
    %92 = arith.mulf %87, %91 : vector<2x32xf32>
    %93 = vector.extract_strided_slice %74 {offsets = [2, 0], sizes = [2, 128], strides = [1, 1]} : vector<16x128xf32> to vector<2x128xf32>
    %cst_31 = arith.constant dense<0.000000e+00> : vector<2x128xf32>
    %94 = tpu.matmul %92, %11, %cst_31 {dimension_numbers = #tpu.dot_dimension_numbers<[1], [0], [0], [1], [0, 0, 1, 1], [], []>} : vector<2x32xf32>, vector<32x128xf32>, vector<2x128xf32> -> vector<2x128xf32>
    %95 = arith.addf %93, %94 : vector<2x128xf32>
    %96 = arith.mulf %95, %52 : vector<2x128xf32>
    %97 = math.tanh %96 : vector<2x128xf32>
    %98 = arith.mulf %97, %52 : vector<2x128xf32>
    %99 = arith.addf %98, %54 : vector<2x128xf32>
    %100 = vector.extract_strided_slice %99 {offsets = [0, 0], sizes = [2, 32], strides = [1, 1]} : vector<2x128xf32> to vector<2x32xf32>
    %101 = vector.extract_strided_slice %99 {offsets = [0, 32], sizes = [2, 32], strides = [1, 1]} : vector<2x128xf32> to vector<2x32xf32>
    %102 = vector.extract_strided_slice %99 {offsets = [0, 64], sizes = [2, 32], strides = [1, 1]} : vector<2x128xf32> to vector<2x32xf32>
    %103 = vector.extract_strided_slice %99 {offsets = [0, 96], sizes = [2, 32], strides = [1, 1]} : vector<2x128xf32> to vector<2x32xf32>
    %104 = arith.mulf %101, %90 : vector<2x32xf32>
    %105 = arith.mulf %100, %102 : vector<2x32xf32>
    %106 = arith.addf %104, %105 : vector<2x32xf32>
    %107 = math.tanh %106 : vector<2x32xf32>
    %108 = arith.mulf %103, %107 : vector<2x32xf32>
    %109 = vector.extract_strided_slice %74 {offsets = [4, 0], sizes = [2, 128], strides = [1, 1]} : vector<16x128xf32> to vector<2x128xf32>
    %cst_32 = arith.constant dense<0.000000e+00> : vector<2x128xf32>
    %110 = tpu.matmul %108, %11, %cst_32 {dimension_numbers = #tpu.dot_dimension_numbers<[1], [0], [0], [1], [0, 0, 1, 1], [], []>} : vector<2x32xf32>, vector<32x128xf32>, vector<2x128xf32> -> vector<2x128xf32>
    %111 = arith.addf %109, %110 : vector<2x128xf32>
    %112 = arith.mulf %111, %52 : vector<2x128xf32>
    %113 = math.tanh %112 : vector<2x128xf32>
    %114 = arith.mulf %113, %52 : vector<2x128xf32>
    %115 = arith.addf %114, %54 : vector<2x128xf32>
    %116 = vector.extract_strided_slice %115 {offsets = [0, 0], sizes = [2, 32], strides = [1, 1]} : vector<2x128xf32> to vector<2x32xf32>
    %117 = vector.extract_strided_slice %115 {offsets = [0, 32], sizes = [2, 32], strides = [1, 1]} : vector<2x128xf32> to vector<2x32xf32>
    %118 = vector.extract_strided_slice %115 {offsets = [0, 64], sizes = [2, 32], strides = [1, 1]} : vector<2x128xf32> to vector<2x32xf32>
    %119 = vector.extract_strided_slice %115 {offsets = [0, 96], sizes = [2, 32], strides = [1, 1]} : vector<2x128xf32> to vector<2x32xf32>
    %120 = arith.mulf %117, %106 : vector<2x32xf32>
    %121 = arith.mulf %116, %118 : vector<2x32xf32>
    %122 = arith.addf %120, %121 : vector<2x32xf32>
    %123 = math.tanh %122 : vector<2x32xf32>
    %124 = arith.mulf %119, %123 : vector<2x32xf32>
    %125 = vector.extract_strided_slice %74 {offsets = [6, 0], sizes = [2, 128], strides = [1, 1]} : vector<16x128xf32> to vector<2x128xf32>
    %cst_33 = arith.constant dense<0.000000e+00> : vector<2x128xf32>
    %126 = tpu.matmul %124, %11, %cst_33 {dimension_numbers = #tpu.dot_dimension_numbers<[1], [0], [0], [1], [0, 0, 1, 1], [], []>} : vector<2x32xf32>, vector<32x128xf32>, vector<2x128xf32> -> vector<2x128xf32>
    %127 = arith.addf %125, %126 : vector<2x128xf32>
    %128 = arith.mulf %127, %52 : vector<2x128xf32>
    %129 = math.tanh %128 : vector<2x128xf32>
    %130 = arith.mulf %129, %52 : vector<2x128xf32>
    %131 = arith.addf %130, %54 : vector<2x128xf32>
    %132 = vector.extract_strided_slice %131 {offsets = [0, 0], sizes = [2, 32], strides = [1, 1]} : vector<2x128xf32> to vector<2x32xf32>
    %133 = vector.extract_strided_slice %131 {offsets = [0, 32], sizes = [2, 32], strides = [1, 1]} : vector<2x128xf32> to vector<2x32xf32>
    %134 = vector.extract_strided_slice %131 {offsets = [0, 64], sizes = [2, 32], strides = [1, 1]} : vector<2x128xf32> to vector<2x32xf32>
    %135 = vector.extract_strided_slice %131 {offsets = [0, 96], sizes = [2, 32], strides = [1, 1]} : vector<2x128xf32> to vector<2x32xf32>
    %136 = arith.mulf %133, %122 : vector<2x32xf32>
    %137 = arith.mulf %132, %134 : vector<2x32xf32>
    %138 = arith.addf %136, %137 : vector<2x32xf32>
    %139 = math.tanh %138 : vector<2x32xf32>
    %140 = arith.mulf %135, %139 : vector<2x32xf32>
    %141 = vector.extract_strided_slice %74 {offsets = [8, 0], sizes = [2, 128], strides = [1, 1]} : vector<16x128xf32> to vector<2x128xf32>
    %cst_34 = arith.constant dense<0.000000e+00> : vector<2x128xf32>
    %142 = tpu.matmul %140, %11, %cst_34 {dimension_numbers = #tpu.dot_dimension_numbers<[1], [0], [0], [1], [0, 0, 1, 1], [], []>} : vector<2x32xf32>, vector<32x128xf32>, vector<2x128xf32> -> vector<2x128xf32>
    %143 = arith.addf %141, %142 : vector<2x128xf32>
    %144 = arith.mulf %143, %52 : vector<2x128xf32>
    %145 = math.tanh %144 : vector<2x128xf32>
    %146 = arith.mulf %145, %52 : vector<2x128xf32>
    %147 = arith.addf %146, %54 : vector<2x128xf32>
    %148 = vector.extract_strided_slice %147 {offsets = [0, 0], sizes = [2, 32], strides = [1, 1]} : vector<2x128xf32> to vector<2x32xf32>
    %149 = vector.extract_strided_slice %147 {offsets = [0, 32], sizes = [2, 32], strides = [1, 1]} : vector<2x128xf32> to vector<2x32xf32>
    %150 = vector.extract_strided_slice %147 {offsets = [0, 64], sizes = [2, 32], strides = [1, 1]} : vector<2x128xf32> to vector<2x32xf32>
    %151 = vector.extract_strided_slice %147 {offsets = [0, 96], sizes = [2, 32], strides = [1, 1]} : vector<2x128xf32> to vector<2x32xf32>
    %152 = arith.mulf %149, %138 : vector<2x32xf32>
    %153 = arith.mulf %148, %150 : vector<2x32xf32>
    %154 = arith.addf %152, %153 : vector<2x32xf32>
    %155 = math.tanh %154 : vector<2x32xf32>
    %156 = arith.mulf %151, %155 : vector<2x32xf32>
    %157 = vector.extract_strided_slice %74 {offsets = [10, 0], sizes = [2, 128], strides = [1, 1]} : vector<16x128xf32> to vector<2x128xf32>
    %cst_35 = arith.constant dense<0.000000e+00> : vector<2x128xf32>
    %158 = tpu.matmul %156, %11, %cst_35 {dimension_numbers = #tpu.dot_dimension_numbers<[1], [0], [0], [1], [0, 0, 1, 1], [], []>} : vector<2x32xf32>, vector<32x128xf32>, vector<2x128xf32> -> vector<2x128xf32>
    %159 = arith.addf %157, %158 : vector<2x128xf32>
    %160 = arith.mulf %159, %52 : vector<2x128xf32>
    %161 = math.tanh %160 : vector<2x128xf32>
    %162 = arith.mulf %161, %52 : vector<2x128xf32>
    %163 = arith.addf %162, %54 : vector<2x128xf32>
    %164 = vector.extract_strided_slice %163 {offsets = [0, 0], sizes = [2, 32], strides = [1, 1]} : vector<2x128xf32> to vector<2x32xf32>
    %165 = vector.extract_strided_slice %163 {offsets = [0, 32], sizes = [2, 32], strides = [1, 1]} : vector<2x128xf32> to vector<2x32xf32>
    %166 = vector.extract_strided_slice %163 {offsets = [0, 64], sizes = [2, 32], strides = [1, 1]} : vector<2x128xf32> to vector<2x32xf32>
    %167 = vector.extract_strided_slice %163 {offsets = [0, 96], sizes = [2, 32], strides = [1, 1]} : vector<2x128xf32> to vector<2x32xf32>
    %168 = arith.mulf %165, %154 : vector<2x32xf32>
    %169 = arith.mulf %164, %166 : vector<2x32xf32>
    %170 = arith.addf %168, %169 : vector<2x32xf32>
    %171 = math.tanh %170 : vector<2x32xf32>
    %172 = arith.mulf %167, %171 : vector<2x32xf32>
    %173 = vector.extract_strided_slice %74 {offsets = [12, 0], sizes = [2, 128], strides = [1, 1]} : vector<16x128xf32> to vector<2x128xf32>
    %cst_36 = arith.constant dense<0.000000e+00> : vector<2x128xf32>
    %174 = tpu.matmul %172, %11, %cst_36 {dimension_numbers = #tpu.dot_dimension_numbers<[1], [0], [0], [1], [0, 0, 1, 1], [], []>} : vector<2x32xf32>, vector<32x128xf32>, vector<2x128xf32> -> vector<2x128xf32>
    %175 = arith.addf %173, %174 : vector<2x128xf32>
    %176 = arith.mulf %175, %52 : vector<2x128xf32>
    %177 = math.tanh %176 : vector<2x128xf32>
    %178 = arith.mulf %177, %52 : vector<2x128xf32>
    %179 = arith.addf %178, %54 : vector<2x128xf32>
    %180 = vector.extract_strided_slice %179 {offsets = [0, 0], sizes = [2, 32], strides = [1, 1]} : vector<2x128xf32> to vector<2x32xf32>
    %181 = vector.extract_strided_slice %179 {offsets = [0, 32], sizes = [2, 32], strides = [1, 1]} : vector<2x128xf32> to vector<2x32xf32>
    %182 = vector.extract_strided_slice %179 {offsets = [0, 64], sizes = [2, 32], strides = [1, 1]} : vector<2x128xf32> to vector<2x32xf32>
    %183 = vector.extract_strided_slice %179 {offsets = [0, 96], sizes = [2, 32], strides = [1, 1]} : vector<2x128xf32> to vector<2x32xf32>
    %184 = arith.mulf %181, %170 : vector<2x32xf32>
    %185 = arith.mulf %180, %182 : vector<2x32xf32>
    %186 = arith.addf %184, %185 : vector<2x32xf32>
    %187 = math.tanh %186 : vector<2x32xf32>
    %188 = arith.mulf %183, %187 : vector<2x32xf32>
    %189 = vector.extract_strided_slice %74 {offsets = [14, 0], sizes = [2, 128], strides = [1, 1]} : vector<16x128xf32> to vector<2x128xf32>
    %cst_37 = arith.constant dense<0.000000e+00> : vector<2x128xf32>
    %190 = tpu.matmul %188, %11, %cst_37 {dimension_numbers = #tpu.dot_dimension_numbers<[1], [0], [0], [1], [0, 0, 1, 1], [], []>} : vector<2x32xf32>, vector<32x128xf32>, vector<2x128xf32> -> vector<2x128xf32>
    %191 = arith.addf %189, %190 : vector<2x128xf32>
    %192 = arith.mulf %191, %52 : vector<2x128xf32>
    %193 = math.tanh %192 : vector<2x128xf32>
    %194 = arith.mulf %193, %52 : vector<2x128xf32>
    %195 = arith.addf %194, %54 : vector<2x128xf32>
    %196 = vector.extract_strided_slice %195 {offsets = [0, 0], sizes = [2, 32], strides = [1, 1]} : vector<2x128xf32> to vector<2x32xf32>
    %197 = vector.extract_strided_slice %195 {offsets = [0, 32], sizes = [2, 32], strides = [1, 1]} : vector<2x128xf32> to vector<2x32xf32>
    %198 = vector.extract_strided_slice %195 {offsets = [0, 64], sizes = [2, 32], strides = [1, 1]} : vector<2x128xf32> to vector<2x32xf32>
    %199 = vector.extract_strided_slice %195 {offsets = [0, 96], sizes = [2, 32], strides = [1, 1]} : vector<2x128xf32> to vector<2x32xf32>
    %200 = arith.mulf %197, %186 : vector<2x32xf32>
    %201 = arith.mulf %196, %198 : vector<2x32xf32>
    %202 = arith.addf %200, %201 : vector<2x32xf32>
    %203 = math.tanh %202 : vector<2x32xf32>
    %204 = arith.mulf %199, %203 : vector<2x32xf32>
    %205 = vector.extract_strided_slice %61 {offsets = [14, 0], sizes = [2, 2], strides = [1, 1]} : vector<16x2xf32> to vector<2x2xf32>
    %c0_38 = arith.constant 0 : index
    %c0_39 = arith.constant 0 : index
    %206 = vector.load %arg1[%c0_38, %c0_39] : memref<2x2xf32, #tpu.memory_space<vmem>>, vector<2x2xf32>
    %c0_40 = arith.constant 0 : index
    %c0_41 = arith.constant 0 : index
    %207 = vector.load %arg2[%c0_40, %c0_41] : memref<16x2xf32, #tpu.memory_space<vmem>>, vector<16x2xf32>
    %208 = vector.extract_strided_slice %205 {offsets = [0, 0], sizes = [2, 1], strides = [1, 1]} : vector<2x2xf32> to vector<2x1xf32>
    %209 = vector.extract_strided_slice %8 {offsets = [0, 0], sizes = [1, 128], strides = [1, 1]} : vector<2x128xf32> to vector<1x128xf32>
    %210 = vector.broadcast %208 : vector<2x1xf32> to vector<2x128xf32>
    %211 = vector.broadcast %209 : vector<1x128xf32> to vector<2x128xf32>
    %212 = arith.mulf %210, %211 : vector<2x128xf32>
    %213 = vector.extract_strided_slice %205 {offsets = [0, 1], sizes = [2, 1], strides = [1, 1]} : vector<2x2xf32> to vector<2x1xf32>
    %214 = vector.extract_strided_slice %8 {offsets = [1, 0], sizes = [1, 128], strides = [1, 1]} : vector<2x128xf32> to vector<1x128xf32>
    %215 = vector.broadcast %213 : vector<2x1xf32> to vector<2x128xf32>
    %216 = vector.broadcast %214 : vector<1x128xf32> to vector<2x128xf32>
    %217 = arith.mulf %215, %216 : vector<2x128xf32>
    %218 = arith.addf %212, %217 : vector<2x128xf32>
    %219 = arith.addf %218, %60 : vector<2x128xf32>
    %cst_42 = arith.constant dense<0.000000e+00> : vector<2x384xf32>
    %220 = tpu.matmul %204, %29, %cst_42 {dimension_numbers = #tpu.dot_dimension_numbers<[1], [0], [0], [1], [0, 0, 1, 1], [], []>} : vector<2x32xf32>, vector<32x384xf32>, vector<2x384xf32> -> vector<2x384xf32>
    %221 = vector.extract_strided_slice %220 {offsets = [0, 0], sizes = [2, 128], strides = [1, 1]} : vector<2x384xf32> to vector<2x128xf32>
    %222 = arith.addf %219, %221 : vector<2x128xf32>
    %cst_43 = arith.constant 0.000000e+00 : f32
    %223 = vector.broadcast %cst_43 : f32 to vector<2x2xf32>
    %cst_44 = arith.constant 0.000000e+00 : f32
    %224 = vector.broadcast %cst_44 : f32 to vector<2x2xf32>
    %225 = arith.mulf %222, %52 : vector<2x128xf32>
    %226 = math.tanh %225 : vector<2x128xf32>
    %227 = arith.mulf %226, %52 : vector<2x128xf32>
    %228 = arith.addf %227, %54 : vector<2x128xf32>
    %229 = vector.extract_strided_slice %228 {offsets = [0, 0], sizes = [2, 32], strides = [1, 1]} : vector<2x128xf32> to vector<2x32xf32>
    %230 = vector.extract_strided_slice %228 {offsets = [0, 32], sizes = [2, 32], strides = [1, 1]} : vector<2x128xf32> to vector<2x32xf32>
    %231 = vector.extract_strided_slice %228 {offsets = [0, 64], sizes = [2, 32], strides = [1, 1]} : vector<2x128xf32> to vector<2x32xf32>
    %232 = vector.extract_strided_slice %228 {offsets = [0, 96], sizes = [2, 32], strides = [1, 1]} : vector<2x128xf32> to vector<2x32xf32>
    %233 = arith.mulf %230, %202 : vector<2x32xf32>
    %234 = arith.mulf %229, %231 : vector<2x32xf32>
    %235 = arith.addf %233, %234 : vector<2x32xf32>
    %236 = math.tanh %235 : vector<2x32xf32>
    %237 = arith.mulf %232, %236 : vector<2x32xf32>
    %cst_45 = arith.constant dense<0.000000e+00> : vector<2x384xf32>
    %238 = tpu.matmul %237, %29, %cst_45 {dimension_numbers = #tpu.dot_dimension_numbers<[1], [0], [0], [1], [0, 0, 1, 1], [], []>} : vector<2x32xf32>, vector<32x384xf32>, vector<2x384xf32> -> vector<2x384xf32>
    %239 = vector.extract_strided_slice %238 {offsets = [0, 256], sizes = [2, 2], strides = [1, 1]} : vector<2x384xf32> to vector<2x2xf32>
    %240 = arith.addf %239, %56 : vector<2x2xf32>
    %241 = arith.addf %205, %240 : vector<2x2xf32>
    %242 = arith.addf %223, %241 : vector<2x2xf32>
    %cst_46 = arith.constant 4.000000e-01 : f32
    %243 = vector.broadcast %cst_46 : f32 to vector<2x2xf32>
    %244 = arith.mulf %243, %242 : vector<2x2xf32>
    %245 = arith.addf %206, %244 : vector<2x2xf32>
    %246 = vector.extract_strided_slice %207 {offsets = [0, 0], sizes = [2, 2], strides = [1, 1]} : vector<16x2xf32> to vector<2x2xf32>
    %247 = arith.subf %246, %245 : vector<2x2xf32>
    %248 = arith.mulf %247, %247 : vector<2x2xf32>
    %249 = arith.addf %224, %248 : vector<2x2xf32>
    %250 = vector.extract_strided_slice %238 {offsets = [0, 128], sizes = [2, 128], strides = [1, 1]} : vector<2x384xf32> to vector<2x128xf32>
    %251 = arith.addf %219, %250 : vector<2x128xf32>
    %252 = arith.addf %251, %58 : vector<2x128xf32>
    %253 = vector.extract_strided_slice %238 {offsets = [0, 0], sizes = [2, 128], strides = [1, 1]} : vector<2x384xf32> to vector<2x128xf32>
    %254 = arith.addf %252, %253 : vector<2x128xf32>
    %255 = arith.mulf %254, %52 : vector<2x128xf32>
    %256 = math.tanh %255 : vector<2x128xf32>
    %257 = arith.mulf %256, %52 : vector<2x128xf32>
    %258 = arith.addf %257, %54 : vector<2x128xf32>
    %259 = vector.extract_strided_slice %258 {offsets = [0, 0], sizes = [2, 32], strides = [1, 1]} : vector<2x128xf32> to vector<2x32xf32>
    %260 = vector.extract_strided_slice %258 {offsets = [0, 32], sizes = [2, 32], strides = [1, 1]} : vector<2x128xf32> to vector<2x32xf32>
    %261 = vector.extract_strided_slice %258 {offsets = [0, 64], sizes = [2, 32], strides = [1, 1]} : vector<2x128xf32> to vector<2x32xf32>
    %262 = vector.extract_strided_slice %258 {offsets = [0, 96], sizes = [2, 32], strides = [1, 1]} : vector<2x128xf32> to vector<2x32xf32>
    %263 = arith.mulf %260, %235 : vector<2x32xf32>
    %264 = arith.mulf %259, %261 : vector<2x32xf32>
    %265 = arith.addf %263, %264 : vector<2x32xf32>
    %266 = math.tanh %265 : vector<2x32xf32>
    %267 = arith.mulf %262, %266 : vector<2x32xf32>
    %cst_47 = arith.constant dense<0.000000e+00> : vector<2x384xf32>
    %268 = tpu.matmul %267, %29, %cst_47 {dimension_numbers = #tpu.dot_dimension_numbers<[1], [0], [0], [1], [0, 0, 1, 1], [], []>} : vector<2x32xf32>, vector<32x384xf32>, vector<2x384xf32> -> vector<2x384xf32>
    %269 = vector.extract_strided_slice %268 {offsets = [0, 256], sizes = [2, 2], strides = [1, 1]} : vector<2x384xf32> to vector<2x2xf32>
    %270 = arith.addf %269, %56 : vector<2x2xf32>
    %271 = arith.addf %241, %270 : vector<2x2xf32>
    %272 = arith.addf %242, %271 : vector<2x2xf32>
    %cst_48 = arith.constant 4.000000e-01 : f32
    %273 = vector.broadcast %cst_48 : f32 to vector<2x2xf32>
    %274 = arith.mulf %273, %272 : vector<2x2xf32>
    %275 = arith.addf %206, %274 : vector<2x2xf32>
    %276 = vector.extract_strided_slice %207 {offsets = [2, 0], sizes = [2, 2], strides = [1, 1]} : vector<16x2xf32> to vector<2x2xf32>
    %277 = arith.subf %276, %275 : vector<2x2xf32>
    %278 = arith.mulf %277, %277 : vector<2x2xf32>
    %279 = arith.addf %249, %278 : vector<2x2xf32>
    %280 = vector.extract_strided_slice %268 {offsets = [0, 128], sizes = [2, 128], strides = [1, 1]} : vector<2x384xf32> to vector<2x128xf32>
    %281 = arith.addf %252, %280 : vector<2x128xf32>
    %282 = arith.addf %281, %58 : vector<2x128xf32>
    %283 = vector.extract_strided_slice %268 {offsets = [0, 0], sizes = [2, 128], strides = [1, 1]} : vector<2x384xf32> to vector<2x128xf32>
    %284 = arith.addf %282, %283 : vector<2x128xf32>
    %285 = arith.mulf %284, %52 : vector<2x128xf32>
    %286 = math.tanh %285 : vector<2x128xf32>
    %287 = arith.mulf %286, %52 : vector<2x128xf32>
    %288 = arith.addf %287, %54 : vector<2x128xf32>
    %289 = vector.extract_strided_slice %288 {offsets = [0, 0], sizes = [2, 32], strides = [1, 1]} : vector<2x128xf32> to vector<2x32xf32>
    %290 = vector.extract_strided_slice %288 {offsets = [0, 32], sizes = [2, 32], strides = [1, 1]} : vector<2x128xf32> to vector<2x32xf32>
    %291 = vector.extract_strided_slice %288 {offsets = [0, 64], sizes = [2, 32], strides = [1, 1]} : vector<2x128xf32> to vector<2x32xf32>
    %292 = vector.extract_strided_slice %288 {offsets = [0, 96], sizes = [2, 32], strides = [1, 1]} : vector<2x128xf32> to vector<2x32xf32>
    %293 = arith.mulf %290, %265 : vector<2x32xf32>
    %294 = arith.mulf %289, %291 : vector<2x32xf32>
    %295 = arith.addf %293, %294 : vector<2x32xf32>
    %296 = math.tanh %295 : vector<2x32xf32>
    %297 = arith.mulf %292, %296 : vector<2x32xf32>
    %cst_49 = arith.constant dense<0.000000e+00> : vector<2x384xf32>
    %298 = tpu.matmul %297, %29, %cst_49 {dimension_numbers = #tpu.dot_dimension_numbers<[1], [0], [0], [1], [0, 0, 1, 1], [], []>} : vector<2x32xf32>, vector<32x384xf32>, vector<2x384xf32> -> vector<2x384xf32>
    %299 = vector.extract_strided_slice %298 {offsets = [0, 256], sizes = [2, 2], strides = [1, 1]} : vector<2x384xf32> to vector<2x2xf32>
    %300 = arith.addf %299, %56 : vector<2x2xf32>
    %301 = arith.addf %271, %300 : vector<2x2xf32>
    %302 = arith.addf %272, %301 : vector<2x2xf32>
    %cst_50 = arith.constant 4.000000e-01 : f32
    %303 = vector.broadcast %cst_50 : f32 to vector<2x2xf32>
    %304 = arith.mulf %303, %302 : vector<2x2xf32>
    %305 = arith.addf %206, %304 : vector<2x2xf32>
    %306 = vector.extract_strided_slice %207 {offsets = [4, 0], sizes = [2, 2], strides = [1, 1]} : vector<16x2xf32> to vector<2x2xf32>
    %307 = arith.subf %306, %305 : vector<2x2xf32>
    %308 = arith.mulf %307, %307 : vector<2x2xf32>
    %309 = arith.addf %279, %308 : vector<2x2xf32>
    %310 = vector.extract_strided_slice %298 {offsets = [0, 128], sizes = [2, 128], strides = [1, 1]} : vector<2x384xf32> to vector<2x128xf32>
    %311 = arith.addf %282, %310 : vector<2x128xf32>
    %312 = arith.addf %311, %58 : vector<2x128xf32>
    %313 = vector.extract_strided_slice %298 {offsets = [0, 0], sizes = [2, 128], strides = [1, 1]} : vector<2x384xf32> to vector<2x128xf32>
    %314 = arith.addf %312, %313 : vector<2x128xf32>
    %315 = arith.mulf %314, %52 : vector<2x128xf32>
    %316 = math.tanh %315 : vector<2x128xf32>
    %317 = arith.mulf %316, %52 : vector<2x128xf32>
    %318 = arith.addf %317, %54 : vector<2x128xf32>
    %319 = vector.extract_strided_slice %318 {offsets = [0, 0], sizes = [2, 32], strides = [1, 1]} : vector<2x128xf32> to vector<2x32xf32>
    %320 = vector.extract_strided_slice %318 {offsets = [0, 32], sizes = [2, 32], strides = [1, 1]} : vector<2x128xf32> to vector<2x32xf32>
    %321 = vector.extract_strided_slice %318 {offsets = [0, 64], sizes = [2, 32], strides = [1, 1]} : vector<2x128xf32> to vector<2x32xf32>
    %322 = vector.extract_strided_slice %318 {offsets = [0, 96], sizes = [2, 32], strides = [1, 1]} : vector<2x128xf32> to vector<2x32xf32>
    %323 = arith.mulf %320, %295 : vector<2x32xf32>
    %324 = arith.mulf %319, %321 : vector<2x32xf32>
    %325 = arith.addf %323, %324 : vector<2x32xf32>
    %326 = math.tanh %325 : vector<2x32xf32>
    %327 = arith.mulf %322, %326 : vector<2x32xf32>
    %cst_51 = arith.constant dense<0.000000e+00> : vector<2x384xf32>
    %328 = tpu.matmul %327, %29, %cst_51 {dimension_numbers = #tpu.dot_dimension_numbers<[1], [0], [0], [1], [0, 0, 1, 1], [], []>} : vector<2x32xf32>, vector<32x384xf32>, vector<2x384xf32> -> vector<2x384xf32>
    %329 = vector.extract_strided_slice %328 {offsets = [0, 256], sizes = [2, 2], strides = [1, 1]} : vector<2x384xf32> to vector<2x2xf32>
    %330 = arith.addf %329, %56 : vector<2x2xf32>
    %331 = arith.addf %301, %330 : vector<2x2xf32>
    %332 = arith.addf %302, %331 : vector<2x2xf32>
    %cst_52 = arith.constant 4.000000e-01 : f32
    %333 = vector.broadcast %cst_52 : f32 to vector<2x2xf32>
    %334 = arith.mulf %333, %332 : vector<2x2xf32>
    %335 = arith.addf %206, %334 : vector<2x2xf32>
    %336 = vector.extract_strided_slice %207 {offsets = [6, 0], sizes = [2, 2], strides = [1, 1]} : vector<16x2xf32> to vector<2x2xf32>
    %337 = arith.subf %336, %335 : vector<2x2xf32>
    %338 = arith.mulf %337, %337 : vector<2x2xf32>
    %339 = arith.addf %309, %338 : vector<2x2xf32>
    %340 = vector.extract_strided_slice %328 {offsets = [0, 128], sizes = [2, 128], strides = [1, 1]} : vector<2x384xf32> to vector<2x128xf32>
    %341 = arith.addf %312, %340 : vector<2x128xf32>
    %342 = arith.addf %341, %58 : vector<2x128xf32>
    %343 = vector.extract_strided_slice %328 {offsets = [0, 0], sizes = [2, 128], strides = [1, 1]} : vector<2x384xf32> to vector<2x128xf32>
    %344 = arith.addf %342, %343 : vector<2x128xf32>
    %345 = arith.mulf %344, %52 : vector<2x128xf32>
    %346 = math.tanh %345 : vector<2x128xf32>
    %347 = arith.mulf %346, %52 : vector<2x128xf32>
    %348 = arith.addf %347, %54 : vector<2x128xf32>
    %349 = vector.extract_strided_slice %348 {offsets = [0, 0], sizes = [2, 32], strides = [1, 1]} : vector<2x128xf32> to vector<2x32xf32>
    %350 = vector.extract_strided_slice %348 {offsets = [0, 32], sizes = [2, 32], strides = [1, 1]} : vector<2x128xf32> to vector<2x32xf32>
    %351 = vector.extract_strided_slice %348 {offsets = [0, 64], sizes = [2, 32], strides = [1, 1]} : vector<2x128xf32> to vector<2x32xf32>
    %352 = vector.extract_strided_slice %348 {offsets = [0, 96], sizes = [2, 32], strides = [1, 1]} : vector<2x128xf32> to vector<2x32xf32>
    %353 = arith.mulf %350, %325 : vector<2x32xf32>
    %354 = arith.mulf %349, %351 : vector<2x32xf32>
    %355 = arith.addf %353, %354 : vector<2x32xf32>
    %356 = math.tanh %355 : vector<2x32xf32>
    %357 = arith.mulf %352, %356 : vector<2x32xf32>
    %cst_53 = arith.constant dense<0.000000e+00> : vector<2x384xf32>
    %358 = tpu.matmul %357, %29, %cst_53 {dimension_numbers = #tpu.dot_dimension_numbers<[1], [0], [0], [1], [0, 0, 1, 1], [], []>} : vector<2x32xf32>, vector<32x384xf32>, vector<2x384xf32> -> vector<2x384xf32>
    %359 = vector.extract_strided_slice %358 {offsets = [0, 256], sizes = [2, 2], strides = [1, 1]} : vector<2x384xf32> to vector<2x2xf32>
    %360 = arith.addf %359, %56 : vector<2x2xf32>
    %361 = arith.addf %331, %360 : vector<2x2xf32>
    %362 = arith.addf %332, %361 : vector<2x2xf32>
    %cst_54 = arith.constant 4.000000e-01 : f32
    %363 = vector.broadcast %cst_54 : f32 to vector<2x2xf32>
    %364 = arith.mulf %363, %362 : vector<2x2xf32>
    %365 = arith.addf %206, %364 : vector<2x2xf32>
    %366 = vector.extract_strided_slice %207 {offsets = [8, 0], sizes = [2, 2], strides = [1, 1]} : vector<16x2xf32> to vector<2x2xf32>
    %367 = arith.subf %366, %365 : vector<2x2xf32>
    %368 = arith.mulf %367, %367 : vector<2x2xf32>
    %369 = arith.addf %339, %368 : vector<2x2xf32>
    %370 = vector.extract_strided_slice %358 {offsets = [0, 128], sizes = [2, 128], strides = [1, 1]} : vector<2x384xf32> to vector<2x128xf32>
    %371 = arith.addf %342, %370 : vector<2x128xf32>
    %372 = arith.addf %371, %58 : vector<2x128xf32>
    %373 = vector.extract_strided_slice %358 {offsets = [0, 0], sizes = [2, 128], strides = [1, 1]} : vector<2x384xf32> to vector<2x128xf32>
    %374 = arith.addf %372, %373 : vector<2x128xf32>
    %375 = arith.mulf %374, %52 : vector<2x128xf32>
    %376 = math.tanh %375 : vector<2x128xf32>
    %377 = arith.mulf %376, %52 : vector<2x128xf32>
    %378 = arith.addf %377, %54 : vector<2x128xf32>
    %379 = vector.extract_strided_slice %378 {offsets = [0, 0], sizes = [2, 32], strides = [1, 1]} : vector<2x128xf32> to vector<2x32xf32>
    %380 = vector.extract_strided_slice %378 {offsets = [0, 32], sizes = [2, 32], strides = [1, 1]} : vector<2x128xf32> to vector<2x32xf32>
    %381 = vector.extract_strided_slice %378 {offsets = [0, 64], sizes = [2, 32], strides = [1, 1]} : vector<2x128xf32> to vector<2x32xf32>
    %382 = vector.extract_strided_slice %378 {offsets = [0, 96], sizes = [2, 32], strides = [1, 1]} : vector<2x128xf32> to vector<2x32xf32>
    %383 = arith.mulf %380, %355 : vector<2x32xf32>
    %384 = arith.mulf %379, %381 : vector<2x32xf32>
    %385 = arith.addf %383, %384 : vector<2x32xf32>
    %386 = math.tanh %385 : vector<2x32xf32>
    %387 = arith.mulf %382, %386 : vector<2x32xf32>
    %cst_55 = arith.constant dense<0.000000e+00> : vector<2x384xf32>
    %388 = tpu.matmul %387, %29, %cst_55 {dimension_numbers = #tpu.dot_dimension_numbers<[1], [0], [0], [1], [0, 0, 1, 1], [], []>} : vector<2x32xf32>, vector<32x384xf32>, vector<2x384xf32> -> vector<2x384xf32>
    %389 = vector.extract_strided_slice %388 {offsets = [0, 256], sizes = [2, 2], strides = [1, 1]} : vector<2x384xf32> to vector<2x2xf32>
    %390 = arith.addf %389, %56 : vector<2x2xf32>
    %391 = arith.addf %361, %390 : vector<2x2xf32>
    %392 = arith.addf %362, %391 : vector<2x2xf32>
    %cst_56 = arith.constant 4.000000e-01 : f32
    %393 = vector.broadcast %cst_56 : f32 to vector<2x2xf32>
    %394 = arith.mulf %393, %392 : vector<2x2xf32>
    %395 = arith.addf %206, %394 : vector<2x2xf32>
    %396 = vector.extract_strided_slice %207 {offsets = [10, 0], sizes = [2, 2], strides = [1, 1]} : vector<16x2xf32> to vector<2x2xf32>
    %397 = arith.subf %396, %395 : vector<2x2xf32>
    %398 = arith.mulf %397, %397 : vector<2x2xf32>
    %399 = arith.addf %369, %398 : vector<2x2xf32>
    %400 = vector.extract_strided_slice %388 {offsets = [0, 128], sizes = [2, 128], strides = [1, 1]} : vector<2x384xf32> to vector<2x128xf32>
    %401 = arith.addf %372, %400 : vector<2x128xf32>
    %402 = arith.addf %401, %58 : vector<2x128xf32>
    %403 = vector.extract_strided_slice %388 {offsets = [0, 0], sizes = [2, 128], strides = [1, 1]} : vector<2x384xf32> to vector<2x128xf32>
    %404 = arith.addf %402, %403 : vector<2x128xf32>
    %405 = arith.mulf %404, %52 : vector<2x128xf32>
    %406 = math.tanh %405 : vector<2x128xf32>
    %407 = arith.mulf %406, %52 : vector<2x128xf32>
    %408 = arith.addf %407, %54 : vector<2x128xf32>
    %409 = vector.extract_strided_slice %408 {offsets = [0, 0], sizes = [2, 32], strides = [1, 1]} : vector<2x128xf32> to vector<2x32xf32>
    %410 = vector.extract_strided_slice %408 {offsets = [0, 32], sizes = [2, 32], strides = [1, 1]} : vector<2x128xf32> to vector<2x32xf32>
    %411 = vector.extract_strided_slice %408 {offsets = [0, 64], sizes = [2, 32], strides = [1, 1]} : vector<2x128xf32> to vector<2x32xf32>
    %412 = vector.extract_strided_slice %408 {offsets = [0, 96], sizes = [2, 32], strides = [1, 1]} : vector<2x128xf32> to vector<2x32xf32>
    %413 = arith.mulf %410, %385 : vector<2x32xf32>
    %414 = arith.mulf %409, %411 : vector<2x32xf32>
    %415 = arith.addf %413, %414 : vector<2x32xf32>
    %416 = math.tanh %415 : vector<2x32xf32>
    %417 = arith.mulf %412, %416 : vector<2x32xf32>
    %cst_57 = arith.constant dense<0.000000e+00> : vector<2x384xf32>
    %418 = tpu.matmul %417, %29, %cst_57 {dimension_numbers = #tpu.dot_dimension_numbers<[1], [0], [0], [1], [0, 0, 1, 1], [], []>} : vector<2x32xf32>, vector<32x384xf32>, vector<2x384xf32> -> vector<2x384xf32>
    %419 = vector.extract_strided_slice %418 {offsets = [0, 256], sizes = [2, 2], strides = [1, 1]} : vector<2x384xf32> to vector<2x2xf32>
    %420 = arith.addf %419, %56 : vector<2x2xf32>
    %421 = arith.addf %391, %420 : vector<2x2xf32>
    %422 = arith.addf %392, %421 : vector<2x2xf32>
    %cst_58 = arith.constant 4.000000e-01 : f32
    %423 = vector.broadcast %cst_58 : f32 to vector<2x2xf32>
    %424 = arith.mulf %423, %422 : vector<2x2xf32>
    %425 = arith.addf %206, %424 : vector<2x2xf32>
    %426 = vector.extract_strided_slice %207 {offsets = [12, 0], sizes = [2, 2], strides = [1, 1]} : vector<16x2xf32> to vector<2x2xf32>
    %427 = arith.subf %426, %425 : vector<2x2xf32>
    %428 = arith.mulf %427, %427 : vector<2x2xf32>
    %429 = arith.addf %399, %428 : vector<2x2xf32>
    %430 = vector.extract_strided_slice %418 {offsets = [0, 128], sizes = [2, 128], strides = [1, 1]} : vector<2x384xf32> to vector<2x128xf32>
    %431 = arith.addf %402, %430 : vector<2x128xf32>
    %432 = arith.addf %431, %58 : vector<2x128xf32>
    %433 = vector.extract_strided_slice %418 {offsets = [0, 0], sizes = [2, 128], strides = [1, 1]} : vector<2x384xf32> to vector<2x128xf32>
    %434 = arith.addf %432, %433 : vector<2x128xf32>
    %435 = arith.mulf %434, %52 : vector<2x128xf32>
    %436 = math.tanh %435 : vector<2x128xf32>
    %437 = arith.mulf %436, %52 : vector<2x128xf32>
    %438 = arith.addf %437, %54 : vector<2x128xf32>
    %439 = vector.extract_strided_slice %438 {offsets = [0, 0], sizes = [2, 32], strides = [1, 1]} : vector<2x128xf32> to vector<2x32xf32>
    %440 = vector.extract_strided_slice %438 {offsets = [0, 32], sizes = [2, 32], strides = [1, 1]} : vector<2x128xf32> to vector<2x32xf32>
    %441 = vector.extract_strided_slice %438 {offsets = [0, 64], sizes = [2, 32], strides = [1, 1]} : vector<2x128xf32> to vector<2x32xf32>
    %442 = vector.extract_strided_slice %438 {offsets = [0, 96], sizes = [2, 32], strides = [1, 1]} : vector<2x128xf32> to vector<2x32xf32>
    %443 = arith.mulf %440, %415 : vector<2x32xf32>
    %444 = arith.mulf %439, %441 : vector<2x32xf32>
    %445 = arith.addf %443, %444 : vector<2x32xf32>
    %446 = math.tanh %445 : vector<2x32xf32>
    %447 = arith.mulf %442, %446 : vector<2x32xf32>
    %cst_59 = arith.constant dense<0.000000e+00> : vector<2x384xf32>
    %448 = tpu.matmul %447, %29, %cst_59 {dimension_numbers = #tpu.dot_dimension_numbers<[1], [0], [0], [1], [0, 0, 1, 1], [], []>} : vector<2x32xf32>, vector<32x384xf32>, vector<2x384xf32> -> vector<2x384xf32>
    %449 = vector.extract_strided_slice %448 {offsets = [0, 256], sizes = [2, 2], strides = [1, 1]} : vector<2x384xf32> to vector<2x2xf32>
    %450 = arith.addf %449, %56 : vector<2x2xf32>
    %451 = arith.addf %421, %450 : vector<2x2xf32>
    %452 = arith.addf %422, %451 : vector<2x2xf32>
    %cst_60 = arith.constant 4.000000e-01 : f32
    %453 = vector.broadcast %cst_60 : f32 to vector<2x2xf32>
    %454 = arith.mulf %453, %452 : vector<2x2xf32>
    %455 = arith.addf %206, %454 : vector<2x2xf32>
    %456 = vector.extract_strided_slice %207 {offsets = [14, 0], sizes = [2, 2], strides = [1, 1]} : vector<16x2xf32> to vector<2x2xf32>
    %457 = arith.subf %456, %455 : vector<2x2xf32>
    %458 = arith.mulf %457, %457 : vector<2x2xf32>
    %459 = arith.addf %429, %458 : vector<2x2xf32>
    %cst_61 = arith.constant dense<0.000000e+00> : vector<2xf32>
    %460 = vector.multi_reduction <add>, %459, %cst_61 [1] : vector<2x2xf32> to vector<2xf32>
    %461 = vector.shape_cast %460 : vector<2xf32> to vector<2x1xf32>
    %cst_62 = arith.constant dense<0.000000e+00> : vector<1xf32>
    %462 = vector.multi_reduction <add>, %461, %cst_62 [0] : vector<2x1xf32> to vector<1xf32>
    %463 = vector.shape_cast %462 : vector<1xf32> to vector<1x1xf32>
    %cst_63 = arith.constant 2.500000e-01 : f32
    %464 = vector.broadcast %cst_63 : f32 to vector<1x1xf32>
    %465 = arith.mulf %463, %464 : vector<1x1xf32>
    %c0_64 = arith.constant 0 : index
    %c0_65 = arith.constant 0 : index
    %466 = vector.load %arg10[%c0_64, %c0_65] : memref<1x1xf32, #tpu.memory_space<vmem>>, vector<1x1xf32>
    tpu.vector_store %arg10[%c0_64, %c0_65], %465 {strides = array<i32>} : memref<1x1xf32, #tpu.memory_space<vmem>>, vector<1x1xf32>,
    return
  }
}

</mosaic_0001>

<bundles_post_ra>
// kernel: forward.1
= control target key start
LH: loop header
LB: loop body
LE: loop exit
PB: predicated region body
PF: predicated region fallthrough
CT: control target
= control target key end

     0   :  { %v3279_v5 = vmov 0.0   ;;  %v3280_v6 = vmov 0.0|0.0   ;;  %vm3281_vm0 = vmmov 0   ;;  %v3282_v12 = vmov 0   ;;  %s3853_s0 = inlined_call_operand.vmem [shape: f32[16,2], index: 0, kind: input, shape index: {}]   ;;  %s3854_s1 = inlined_call_operand.vmem [shape: f32[2,2], index: 1, kind: input, shape index: {}]   ;;  %s3855_s2 = inlined_call_operand.vmem [shape: f32[16,2], index: 2, kind: input, shape index: {}]   ;;  %s3856_s3 = inlined_call_operand.vmem [shape: f32[3,16], index: 3, kind: input, shape index: {}]   ;;  %s3857_s4 = inlined_call_operand.vmem [shape: f32[16,256], index: 4, kind: input, shape index: {}]   ;;  %s3858_s5 = inlined_call_operand.vmem [shape: f32[1,256], index: 5, kind: input, shape index: {}]   ;;  %s3859_s6 = inlined_call_operand.vmem [shape: f32[32,128], index: 6, kind: input, shape index: {}]   ;;  %s3860_s7 = inlined_call_operand.vmem [shape: f32[32,128], index: 7, kind: input, shape index: {}]   ;;  %s3861_s8 = inlined_call_operand.vmem [shape: f32[32,128], index: 8, kind: input, shape index: {}]   ;;  %s3862_s9 = inlined_call_operand.vmem [shape: f32[1,2], index: 9, kind: input, shape index: {}]   ;;  %s3863_s10 = inlined_call_operand.hbm [shape: f32[1,1], index: 10, kind: output, shape index: {}]  }
   0x1   :  { %v38_v0 = vld [vmem:[%s3857_s4 + $0x8] sm:$0xff]  ;;  %v40_v1 = vld [vmem:[%s3857_s4 + $0x18] sm:$0xff]  ;;  %v37_v2 = vld [vmem:[%s3857_s4] sm:$0xff]  ;;  %109 = vmatprep.mubr.f32.mxu0 %v3279_v5  ;;  %3012 = vmatprep.subr.bf16.mxu1 %v3280_v6 }
   0x2   :  { %v3008_v3 = vpack.c.bf16 %v40_v1, %v38_v0  ;;  %v39_v4 = vld [vmem:[%s3857_s4 + $0x10] sm:$0xff]  ;;  %v130_v7 = vld [vmem:[%s3859_s6] sm:$0xff]  ;;  %v131_v9 = vld [vmem:[%s3859_s6 + $0x8] sm:$0xff]  ;;  %2840 = vmatprep.mubr.msk.f32.mxu1 %vm3281_vm0, %v3279_v5  ;;  %3181 = vset.pattern.permute.xlu0 %v3282_v12 }
   0x3   :  { %v3010_v8 = vpack.c.bf16 %v39_v4, %v37_v2  ;;  %v132_v10 = vld [vmem:[%s3859_s6 + $0x10] sm:$0xff]  ;;  %v133_v11 = vld [vmem:[%s3859_s6 + $0x18] sm:$0xff]  ;;  %v3372_v13 = vpack.c.bf16 %v131_v9, %v130_v7  ;;  %v268_v14 = vld [vmem:[%s3853_s0] sm:$0xff]  ;;  %3183 = vset.pattern.permute.xlu1 %v3282_v12 }
   0x4   :  { %3009 = vmatprep.subr.bf16.mxu0 %v3008_v3 }
   0x5   :  { %15 = vsyncpa [#allocation4], 0  ;;  %3011 = vmatpush1.bf16.msra.mxu0 %v3010_v8  ;;  %v36_v15 = vld [vmem:[%s3856_s3] sm:$0x7]  ;;  %vm41_vm1 = vcmask 130048   ;;  %272 = vperm.xlu0 %3181, %v268_v14   ;;  %v3382_v16 = vpack.c.bf16 %v133_v11, %v132_v10  ;;  %v3283_v17 = vmov 1   ;;  %v118_v18 = vlaneseq }
   0x6   :  { %3014 = vmatpush3.bf16.msra.mxu1 %v3372_v13  ;;  %3018 = vmatprep.subr.bf16.mxu0 %v3280_v6  ;;  %v116_v22 = vld [vmem:[%s3858_s5] sm:$0x3]  ;;  %v3284_v43 = vmov 0.5   ;;  %s3285_s5 = smov 64   ;;  %s3286_s12 = smov 32   ;;  %vm308_vm5 = vcmask 261120  }
   0x7   :  { %3015 = vmatprep.subr.bf16.mxu1 %v3280_v6  ;;  %v119_v19 = vshrl.u32 %v118_v18, 7  ;;  %v248_v25 = vand.u32 127, %v118_v18  ;;  %vm2698_vm6 = vcmask 9216   ;;  %vm2702_vm7 = vcmask 1041408  }
   0x8   :  { %2727 = vmatmul.mubr.msk.f32.vlgmr.msra.gmra.mrb[0].mxu0 %vm41_vm1, %v36_v15  ;;  %vm2711_vm8 = vcmask 0  }
   0x9   :  { %3182 = vset.pattern.permute.xlu0 %v3283_v17  ;;  %3020 = vmatpush3.bf16.msra.mxu0 %v3372_v13  ;;  %v3402_v20 = vsub.s32 0, %v119_v19  ;;  %v3407_v23 = vsub.s32 1, %v119_v19  ;;  %v266_v28 = vsub.s32 2, %v119_v19  ;;  %vm249_vm2 = vcmp.ge.s32.totalorder %v248_v25, 64 }
   0xa   :  { %3017 = vmatpush3.bf16.msra.mxu1 %v3382_v16  ;;  %287 = vperm.xlu0 %3182, %v268_v14   ;;  %vm250_vm3 = vcmp.lt.s32.totalorder %v248_v25, 96 }
   0xb   :  { %3021 = vmatprep.subr.bf16.mxu0 %v3280_v6  ;;  %2851 = vmatprep.mubr.msk.f32.mxu0 %vm3281_vm0, %v3279_v5  ;;  %v121_v24 = vrot.slane %v116_v22, %v3402_v20  ;;  %v125_v26 = vrot.slane %v116_v22, %v3407_v23  ;;  %vm251_vm4 = vmand %vm249_vm2, %vm250_vm3 }
   0xc   :  { %3024 = vmatprep.subr.bf16.mxu1 %v3280_v6  ;;  %v3429_v44 = vsel %vm251_vm4, 1.0, %v3284_v43  ;;  %v3433_v48 = vsel %vm251_vm4, 0.0, %v3284_v43 }
   0xd   :  { %2841 = vmatmul.mubr.f32.vlgmr.msra.gmra.mrb[0].mxu1 %v3279_v5  ;;  %3023 = vmatpush3.bf16.msra.mxu0 %v3382_v16 }
   0xe   :  { %3026 = vmatpush3.bf16.msra.mxu1 %v3372_v13  ;;  %2862 = vmatprep.mubr.msk.f32.mxu1 %vm3281_vm0, %v3279_v5 }
   0xf   :  { %3027 = vmatprep.subr.bf16.mxu1 %v3280_v6  ;;  %3030 = vmatprep.subr.bf16.mxu0 %v3280_v6 }
  0x12   :  { %3029 = vmatpush3.bf16.msra.mxu1 %v3382_v16 }
  0x13   :  { %3036 = vmatprep.subr.bf16.mxu1 %v3280_v6 }
  0x84   :  { %v273_v21 = vpop.permute.xlu0 %272 }
  0x89   :  { %v288_v29 = vpop.permute.xlu0 %287 }
  0xdb   :  { %v111_v27 = vpop.f32.mrb[0].mxu0 }
  0xdc   :  { %v128_v30 = vadd.f32 %v121_v24, %v111_v27  ;;  %v3412_v31 = vrot.slane %v111_v27, %v3402_v20  ;;  %v3414_v32 = vpop.f32.mrb[1].mxu0  ;;  %v3417_v33 = vrot.slane %v111_v27, %v3407_v23 }
  0xdd   :  { %v129_v34 = vadd.f32 %v125_v26, %v3414_v32 }
  0xde   :  { %v284_v35 = vmul.f32 %v3412_v31, %v273_v21  ;;  %v298_v36 = vmul.f32 %v3417_v33, %v288_v29  ;;  %v3424_v38 = vrot.slane %v128_v30, %v266_v28 }
  0xdf   :  { %v3422_v37 = vrot.slane %v129_v34, %v266_v28 }
  0xe0   :  { %v300_v39 = vadd.f32 %v298_v36, %v284_v35  ;;  %v378_v40 = vpop.f32.mrb[0].mxu1 }
  0xe1   :  { %v2842_v41 = vpop.f32.mrb[1].mxu1 }
  0xe2   :  { %v3427_v42 = vadd.f32 %v3424_v38, %v300_v39 }
  0xe4   :  { %v382_v45 = vadd.f32 %v378_v40, %v3427_v42 }
  0xe6   :  { %v383_v46 = vmul.f32 %v382_v45, %v3429_v44 }
  0xe8   :  { %3191 = vtanh.f32 %v383_v46 }
  0xf2   :  { %v3192_v47 = vpop.eup %3191 }
  0xf3   :  { %v385_v49 = vmul.f32 %v3192_v47, %v3429_v44 }
  0xf5   :  { %v386_v50 = vadd.f32 %v385_v49, %v3433_v48 }
  0xf7   :  { %389 = vrot.lane.b32.xlu1 %v386_v50, %s3285_s5  ;;  %v387_v53 = vmul.f32 0.0, %v386_v50 }
 0x169   :  { %v390_v51 = vpop.permute.xlu1 %389 }
 0x16a   :  { %v392_v52 = vmul.f32 %v390_v51, %v386_v50 }
 0x16c   :  { %394 = vrot.lane.b32.xlu1 %v392_v52, %s3286_s12 }
 0x1de   :  { %v395_v54 = vpop.permute.xlu1 %394 }
 0x1df   :  { %v397_v55 = vadd.f32 %v395_v54, %v387_v53 }
 0x1e1   :  { %3193 = vtanh.f32 %v397_v55  ;;  %v488_v8 = vrot.slane %v397_v55, 6 }
 0x1eb   :  { %v3194_v56 = vpop.eup %3193 }
 0x1ec   :  { %400 = vrot.lane.b32.xlu1 %v3194_v56, %s3285_s5 }
 0x25e   :  { %v401_v57 = vpop.permute.xlu1 %400 }
 0x25f   :  { %v403_v58 = vmul.f32 %v401_v57, %v386_v50 }
 0x261   :  { %405 = vrot.lane.b32.xlu0 %v403_v58, %s3286_s12 }
 0x2d3   :  { %v406_v59 = vpop.permute.xlu0 %405 }
 0x2d4   :  { %2852 = vmatmul.mubr.msk.f32.vlgmr.msra.gmra.mrb[2].mxu0 %vm308_vm5, %v406_v59 }
 0x2d5   :  { %3032 = vmatpush3.bf16.msra.mxu0 %v3372_v13  ;;  %2873 = vmatprep.mubr.msk.f32.mxu0 %vm3281_vm0, %v3279_v5 }
 0x2d6   :  { %3033 = vmatprep.subr.bf16.mxu0 %v3280_v6 }
 0x2d9   :  { %3035 = vmatpush3.bf16.msra.mxu0 %v3382_v16 }
 0x2da   :  { %3042 = vmatprep.subr.bf16.mxu0 %v3280_v6 }
 0x3a7   :  { %v475_v60 = vpop.f32.mrb[2].mxu0 }
 0x3a8   :  { %v480_v61 = vrot.slane %v475_v60, 6  ;;  %v2853_v62 = vpop.f32.mrb[3].mxu0 }
 0x3aa   :  { %v482_v63 = vadd.f32 %v480_v61, %v3427_v42 }
 0x3ac   :  { %v483_v0 = vmul.f32 %v482_v63, %v3429_v44 }
 0x3ae   :  { %3195 = vtanh.f32 %v483_v0  ;;  %v3488_v0 = vld [vmem:[%s3853_s0 + $0x8] sm:$0xff] }
 0x3b8   :  { %v3196_v1 = vpop.eup %3195 }
 0x3b9   :  { %v485_v2 = vmul.f32 %v3196_v1, %v3429_v44 }
 0x3bb   :  { %v486_v3 = vadd.f32 %v485_v2, %v3433_v48 }
 0x3bd   :  { %492 = vrot.lane.b32.xlu1 %v486_v3, %s3285_s5  ;;  %v490_v9 = vmul.f32 %v488_v8, %v486_v3 }
 0x42f   :  { %v493_v4 = vpop.permute.xlu1 %492 }
 0x430   :  { %v495_v7 = vmul.f32 %v493_v4, %v486_v3 }
 0x432   :  { %497 = vrot.lane.b32.xlu0 %v495_v7, %s3286_s12 }
 0x4a4   :  { %v498_v10 = vpop.permute.xlu0 %497 }
 0x4a5   :  { %v500_v11 = vadd.f32 %v498_v10, %v490_v9 }
 0x4a7   :  { %3197 = vtanh.f32 %v500_v11  ;;  %v592_v36 = vrot.slane %v500_v11, 6 }
 0x4b1   :  { %v3198_v14 = vpop.eup %3197 }
 0x4b2   :  { %503 = vrot.lane.b32.xlu1 %v3198_v14, %s3285_s5 }
 0x524   :  { %v504_v15 = vpop.permute.xlu1 %503 }
 0x525   :  { %v506_v18 = vmul.f32 %v504_v15, %v486_v3 }
 0x527   :  { %v508_v19 = vrot.slane %v506_v18, 2 }
 0x529   :  { %509 = vrot.lane.b32.xlu0 %v508_v19, %s3286_s12 }
 0x59b   :  { %v510_v21 = vpop.permute.xlu0 %509 }
 0x59c   :  { %2863 = vmatmul.mubr.msk.f32.vlgmr.msra.gmra.mrb[2].mxu1 %vm308_vm5, %v510_v21 }
 0x59d   :  { %3038 = vmatpush3.bf16.msra.mxu1 %v3372_v13  ;;  %2884 = vmatprep.mubr.msk.f32.mxu1 %vm3281_vm0, %v3279_v5 }
 0x59e   :  { %3039 = vmatprep.subr.bf16.mxu1 %v3280_v6 }
 0x5a1   :  { %3041 = vmatpush3.bf16.msra.mxu1 %v3382_v16 }
 0x5a2   :  { %3048 = vmatprep.subr.bf16.mxu1 %v3280_v6 }
 0x66f   :  { %v579_v22 = vpop.f32.mrb[2].mxu1 }
 0x670   :  { %v584_v24 = vrot.slane %v579_v22, 4  ;;  %v2864_v25 = vpop.f32.mrb[3].mxu1 }
 0x672   :  { %v586_v26 = vadd.f32 %v584_v24, %v3427_v42 }
 0x674   :  { %v587_v27 = vmul.f32 %v586_v26, %v3429_v44 }
 0x676   :  { %3199 = vtanh.f32 %v587_v27 }
 0x680   :  { %v3200_v28 = vpop.eup %3199 }
 0x681   :  { %v589_v29 = vmul.f32 %v3200_v28, %v3429_v44 }
 0x683   :  { %v590_v30 = vadd.f32 %v589_v29, %v3433_v48 }
 0x685   :  { %596 = vrot.lane.b32.xlu1 %v590_v30, %s3285_s5  ;;  %v594_v39 = vmul.f32 %v592_v36, %v590_v30 }
 0x6f7   :  { %v597_v34 = vpop.permute.xlu1 %596 }
 0x6f8   :  { %v599_v35 = vmul.f32 %v597_v34, %v590_v30 }
 0x6fa   :  { %601 = vrot.lane.b32.xlu0 %v599_v35, %s3286_s12 }
 0x76c   :  { %v602_v40 = vpop.permute.xlu0 %601 }
 0x76d   :  { %v604_v41 = vadd.f32 %v602_v40, %v594_v39 }
 0x76f   :  { %3201 = vtanh.f32 %v604_v41  ;;  %v696_v60 = vrot.slane %v604_v41, 6 }
 0x779   :  { %v3202_v43 = vpop.eup %3201 }
 0x77a   :  { %607 = vrot.lane.b32.xlu1 %v3202_v43, %s3285_s5 }
 0x7ec   :  { %v608_v45 = vpop.permute.xlu1 %607 }
 0x7ed   :  { %v610_v46 = vmul.f32 %v608_v45, %v590_v30 }
 0x7ef   :  { %v612_v47 = vrot.slane %v610_v46, 4 }
 0x7f1   :  { %613 = vrot.lane.b32.xlu0 %v612_v47, %s3286_s12 }
 0x863   :  { %v614_v49 = vpop.permute.xlu0 %613 }
 0x864   :  { %2874 = vmatmul.mubr.msk.f32.vlgmr.msra.gmra.mrb[4].mxu0 %vm308_vm5, %v614_v49 }
 0x865   :  { %3044 = vmatpush3.bf16.msra.mxu0 %v3372_v13  ;;  %2895 = vmatprep.mubr.msk.f32.mxu0 %vm3281_vm0, %v3279_v5 }
 0x866   :  { %3045 = vmatprep.subr.bf16.mxu0 %v3280_v6 }
 0x869   :  { %3047 = vmatpush3.bf16.msra.mxu0 %v3382_v16 }
 0x86a   :  { %3054 = vmatprep.subr.bf16.mxu0 %v3280_v6 }
 0x937   :  { %v683_v50 = vpop.f32.mrb[4].mxu0 }
 0x938   :  { %v688_v51 = vrot.slane %v683_v50, 2  ;;  %v2875_v52 = vpop.f32.mrb[5].mxu0 }
 0x93a   :  { %v690_v53 = vadd.f32 %v688_v51, %v3427_v42 }
 0x93c   :  { %v691_v54 = vmul.f32 %v690_v53, %v3429_v44 }
 0x93e   :  { %3203 = vtanh.f32 %v691_v54 }
 0x948   :  { %v3204_v55 = vpop.eup %3203 }
 0x949   :  { %v693_v56 = vmul.f32 %v3204_v55, %v3429_v44 }
 0x94b   :  { %v694_v57 = vadd.f32 %v693_v56, %v3433_v48 }
 0x94d   :  { %700 = vrot.lane.b32.xlu1 %v694_v57, %s3285_s5  ;;  %v698_v61 = vmul.f32 %v696_v60, %v694_v57 }
 0x9bf   :  { %v701_v58 = vpop.permute.xlu1 %700 }
 0x9c0   :  { %v703_v59 = vmul.f32 %v701_v58, %v694_v57 }
 0x9c2   :  { %705 = vrot.lane.b32.xlu0 %v703_v59, %s3286_s12 }
 0xa34   :  { %v706_v62 = vpop.permute.xlu0 %705 }
 0xa35   :  { %v708_v63 = vadd.f32 %v706_v62, %v698_v61 }
 0xa37   :  { %3205 = vtanh.f32 %v708_v63 }
 0xa41   :  { %v3206_v42 = vpop.eup %3205 }
 0xa42   :  { %711 = vrot.lane.b32.xlu1 %v3206_v42, %s3285_s5 }
 0xa46   :  { %277 = vperm.xlu1 %3183, %v3488_v0  }
 0xab4   :  { %v712_v1 = vpop.permute.xlu1 %711 }
 0xab5   :  { %v714_v2 = vmul.f32 %v712_v1, %v694_v57 }
 0xab7   :  { %v716_v3 = vrot.slane %v714_v2, 6 }
 0xab9   :  { %717 = vrot.lane.b32.xlu0 %v716_v3, %s3286_s12 }
 0xabd   :  { %291 = vperm.xlu0 %3182, %v3488_v0  }
 0xac1   :  { %3184 = vset.pattern.permute.xlu0 %v3282_v12 }
 0xac5   :  { %v3502_v8 = vpop.permute.xlu1 %277 }
 0xac6   :  { %v285_v10 = vmul.f32 %v3412_v31, %v3502_v8 }
 0xb2b   :  { %v718_v4 = vpop.permute.xlu0 %717 }
 0xb2c   :  { %2885 = vmatmul.mubr.msk.f32.vlgmr.msra.gmra.mrb[4].mxu1 %vm308_vm5, %v718_v4 }
 0xb2d   :  { %3050 = vmatpush3.bf16.msra.mxu1 %v3372_v13  ;;  %2906 = vmatprep.mubr.msk.f32.mxu1 %vm3281_vm0, %v3279_v5 }
 0xb2e   :  { %3051 = vmatprep.subr.bf16.mxu1 %v3280_v6 }
 0xb31   :  { %3053 = vmatpush3.bf16.msra.mxu1 %v3382_v16 }
 0xb3c   :  { %v3500_v7 = vpop.permute.xlu0 %291 }
 0xb3d   :  { %v299_v9 = vmul.f32 %v3417_v33, %v3500_v7 }
 0xb3f   :  { %v301_v11 = vadd.f32 %v299_v9, %v285_v10 }
 0xb41   :  { %v3509_v14 = vadd.f32 %v3424_v38, %v301_v11  ;;  %v797_v38 = vrot.slane %v708_v63, 6 }
 0xbff   :  { %v787_v15 = vpop.f32.mrb[4].mxu1 }
 0xc00   :  { %v791_v18 = vadd.f32 %v787_v15, %v3509_v14  ;;  %v2886_v19 = vpop.f32.mrb[5].mxu1 }
 0xc02   :  { %v792_v21 = vmul.f32 %v791_v18, %v3429_v44 }
 0xc04   :  { %3207 = vtanh.f32 %v792_v21 }
 0xc0e   :  { %v3208_v22 = vpop.eup %3207 }
 0xc0f   :  { %v794_v24 = vmul.f32 %v3208_v22, %v3429_v44 }
 0xc11   :  { %v795_v25 = vadd.f32 %v794_v24, %v3433_v48 }
 0xc13   :  { %801 = vrot.lane.b32.xlu1 %v795_v25, %s3285_s5  ;;  %v799_v26 = vmul.f32 %v797_v38, %v795_v25 }
 0xc85   :  { %v802_v33 = vpop.permute.xlu1 %801 }
 0xc86   :  { %v804_v31 = vmul.f32 %v802_v33, %v795_v25 }
 0xc88   :  { %806 = vrot.lane.b32.xlu0 %v804_v31, %s3286_s12 }
 0xcfa   :  { %v807_v27 = vpop.permute.xlu0 %806 }
 0xcfb   :  { %v809_v28 = vadd.f32 %v807_v27, %v799_v26 }
 0xcfd   :  { %3209 = vtanh.f32 %v809_v28 }
 0xd07   :  { %v3210_v29 = vpop.eup %3209 }
 0xd08   :  { %812 = vrot.lane.b32.xlu1 %v3210_v29, %s3285_s5 }
 0xd7a   :  { %v813_v30 = vpop.permute.xlu1 %812 }
 0xd7b   :  { %v815_v34 = vmul.f32 %v813_v30, %v795_v25 }
 0xd7d   :  { %817 = vrot.lane.b32.xlu0 %v815_v34, %s3286_s12  ;;  %v3554_v34 = vld [vmem:[%s3861_s8] sm:$0xff] }
 0xdef   :  { %v818_v35 = vpop.permute.xlu0 %817 }
 0xdf0   :  { %2896 = vmatmul.mubr.msk.f32.vlgmr.msra.gmra.mrb[6].mxu0 %vm308_vm5, %v818_v35  ;;  %v3567_v35 = vld [vmem:[%s3861_s8 + $0x10] sm:$0xff] }
 0xdf1   :  { %3056 = vmatpush3.bf16.msra.mxu0 %v3372_v13  ;;  %2917 = vmatprep.mubr.msk.f32.mxu0 %vm3281_vm0, %v3279_v5 }
 0xdf2   :  { %3057 = vmatprep.subr.bf16.mxu0 %v3280_v6 }
 0xdf5   :  { %3059 = vmatpush3.bf16.msra.mxu0 %v3382_v16  ;;  %v900_v16 = vrot.slane %v809_v28, 6 }
 0xec3   :  { %v887_v36 = vpop.f32.mrb[6].mxu0 }
 0xec4   :  { %v892_v39 = vrot.slane %v887_v36, 6  ;;  %v2897_v40 = vpop.f32.mrb[7].mxu0 }
 0xec6   :  { %v894_v41 = vadd.f32 %v892_v39, %v3509_v14 }
 0xec8   :  { %v895_v43 = vmul.f32 %v894_v41, %v3429_v44 }
 0xeca   :  { %3211 = vtanh.f32 %v895_v43 }
 0xed4   :  { %v3212_v45 = vpop.eup %3211 }
 0xed5   :  { %v897_v46 = vmul.f32 %v3212_v45, %v3429_v44  ;;  %v137_v45 = vld [vmem:[%s3861_s8 + $0x18] sm:$0xff] }
 0xed7   :  { %v898_v13 = vadd.f32 %v897_v46, %v3433_v48 }
 0xed9   :  { %904 = vrot.lane.b32.xlu1 %v898_v13, %s3285_s5  ;;  %v902_v50 = vmul.f32 %v900_v16, %v898_v13 }
 0xf4b   :  { %v905_v47 = vpop.permute.xlu1 %904 }
 0xf4c   :  { %v907_v49 = vmul.f32 %v905_v47, %v898_v13 }
 0xf4e   :  { %909 = vrot.lane.b32.xlu0 %v907_v49, %s3286_s12 }
 0xfc0   :  { %v910_v51 = vpop.permute.xlu0 %909 }
 0xfc1   :  { %v912_v52 = vadd.f32 %v910_v51, %v902_v50  ;;  %v186_v51 = vrot.slane %v3414_v32, %v3407_v23 }
 0xfc3   :  { %3213 = vtanh.f32 %v912_v52  ;;  %v1004_v4 = vrot.slane %v912_v52, 6 }
 0xfcd   :  { %v3214_v53 = vpop.eup %3213 }
 0xfce   :  { %915 = vrot.lane.b32.xlu1 %v3214_v53, %s3285_s5 }
0x1040   :  { %v916_v54 = vpop.permute.xlu1 %915 }
0x1041   :  { %v918_v55 = vmul.f32 %v916_v54, %v898_v13 }
0x1043   :  { %v920_v56 = vrot.slane %v918_v55, 2 }
0x1045   :  { %921 = vrot.lane.b32.xlu0 %v920_v56, %s3286_s12 }
0x10b7   :  { %v922_v57 = vpop.permute.xlu0 %921 }
0x10b8   :  { %2907 = vmatmul.mubr.msk.f32.vlgmr.msra.gmra.mrb[6].mxu1 %vm308_vm5, %v922_v57  ;;  %v195_v57 = vld [vmem:[%s3860_s7] sm:$0xff] }
0x10b9   :  { %1204 = vmatprep.mubr.f32.mxu1 %v3279_v5 }
0x118b   :  { %v991_v58 = vpop.f32.mrb[6].mxu1 }
0x118c   :  { %v996_v59 = vrot.slane %v991_v58, 4  ;;  %v2908_v60 = vpop.f32.mrb[7].mxu1  ;;  %v196_v58 = vld [vmem:[%s3860_s7 + $0x8] sm:$0xff] }
0x118e   :  { %v998_v61 = vadd.f32 %v996_v59, %v3509_v14 }
0x1190   :  { %v999_v62 = vmul.f32 %v998_v61, %v3429_v44  ;;  %v3595_v61 = vpack.c.bf16 %v196_v58, %v195_v57 }
0x1192   :  { %3215 = vtanh.f32 %v999_v62 }
0x119c   :  { %v3216_v63 = vpop.eup %3215 }
0x119d   :  { %v1001_v42 = vmul.f32 %v3216_v63, %v3429_v44 }
0x119f   :  { %v1002_v1 = vadd.f32 %v1001_v42, %v3433_v48 }
0x11a1   :  { %1008 = vrot.lane.b32.xlu1 %v1002_v1, %s3285_s5  ;;  %v1006_v9 = vmul.f32 %v1004_v4, %v1002_v1 }
0x1213   :  { %v1009_v2 = vpop.permute.xlu1 %1008 }
0x1214   :  { %v1011_v3 = vmul.f32 %v1009_v2, %v1002_v1 }
0x1216   :  { %1013 = vrot.lane.b32.xlu0 %v1011_v3, %s3286_s12 }
0x1288   :  { %v1014_v10 = vpop.permute.xlu0 %1013 }
0x1289   :  { %v1016_v11 = vadd.f32 %v1014_v10, %v1006_v9  ;;  %v197_v10 = vld [vmem:[%s3860_s7 + $0x10] sm:$0xff] }
0x128b   :  { %3217 = vtanh.f32 %v1016_v11  ;;  %v1108_v36 = vrot.slane %v1016_v11, 6  ;;  %v198_v11 = vld [vmem:[%s3860_s7 + $0x18] sm:$0xff] }
0x1295   :  { %v3218_v15 = vpop.eup %3217 }
0x1296   :  { %1019 = vrot.lane.b32.xlu1 %v3218_v15, %s3285_s5 }
0x1308   :  { %v1020_v18 = vpop.permute.xlu1 %1019 }
0x1309   :  { %v1022_v19 = vmul.f32 %v1020_v18, %v1002_v1 }
0x130b   :  { %v1024_v21 = vrot.slane %v1022_v19, 4  ;;  %v3609_v19 = vpack.c.bf16 %v198_v11, %v197_v10 }
0x130d   :  { %1025 = vrot.lane.b32.xlu0 %v1024_v21, %s3286_s12 }
0x137f   :  { %v1026_v22 = vpop.permute.xlu0 %1025 }
0x1380   :  { %2918 = vmatmul.mubr.msk.f32.vlgmr.msra.gmra.mrb[8].mxu0 %vm308_vm5, %v1026_v22 }
0x1381   :  { %1305 = vmatprep.mubr.f32.mxu0 %v3279_v5 }
0x1453   :  { %v1095_v24 = vpop.f32.mrb[8].mxu0 }
0x1454   :  { %v1100_v25 = vrot.slane %v1095_v24, 2  ;;  %v2919_v33 = vpop.f32.mrb[9].mxu0 }
0x1455   :  { %v1131_v33 = vmul.f32 %v3500_v7, %v186_v51 }
0x1456   :  { %v1102_v31 = vadd.f32 %v1100_v25, %v3509_v14  ;;  %v3560_v14 = vld [vmem:[%s3861_s8 + $0x8] sm:$0xff]  ;;  %v3625_v25 = vpack.c.bf16 %v137_v45, %v3567_v35 }
0x1457   :  { %v3621_v22 = vpack.c.bf16 %v3560_v14, %v3554_v34 }
0x1458   :  { %v1103_v38 = vmul.f32 %v1102_v31, %v3429_v44 }
0x145a   :  { %3219 = vtanh.f32 %v1103_v38 }
0x1464   :  { %v3220_v26 = vpop.eup %3219 }
0x1465   :  { %v1105_v27 = vmul.f32 %v3220_v26, %v3429_v44 }
0x1467   :  { %v1106_v28 = vadd.f32 %v1105_v27, %v3433_v48 }
0x1469   :  { %1112 = vrot.lane.b32.xlu1 %v1106_v28, %s3285_s5  ;;  %v1110_v39 = vmul.f32 %v1108_v36, %v1106_v28 }
0x14db   :  { %v1113_v29 = vpop.permute.xlu1 %1112 }
0x14dc   :  { %v1115_v30 = vmul.f32 %v1113_v29, %v1106_v28 }
0x14de   :  { %1117 = vrot.lane.b32.xlu0 %v1115_v30, %s3286_s12 }
0x14e2   :  { %141 = vperm.xlu0 %3184, %v3554_v34  }
0x14e6   :  { %3186 = vset.pattern.permute.xlu0 %v3283_v17 }
0x14e7   :  { %172 = vperm.xlu0 %3186, %v3560_v14  }
0x14eb   :  { %176 = vperm.xlu0 %3186, %v3567_v35  }
0x14ef   :  { %3189 = vset.pattern.permute.xlu0 %v3282_v12 }
0x1550   :  { %v1118_v40 = vpop.permute.xlu0 %1117 }
0x1551   :  { %v3571_v41 = vadd.f32 %v1118_v40, %v1110_v39 }
0x1553   :  { %3221 = vtanh.f32 %v3571_v41 }
0x155d   :  { %v3222_v43 = vpop.eup %3221 }
0x155e   :  { %1123 = vrot.lane.b32.xlu1 %v3222_v43, %s3285_s5 }
0x1561   :  { %v142_v49 = vpop.permute.xlu0 %141 }
0x1562   :  { %146 = vperm.xlu1 %3183, %v3560_v14  }
0x1566   :  { %3185 = vset.pattern.permute.xlu1 %v3283_v17  ;;  %v173_v50 = vpop.permute.xlu0 %172 }
0x1567   :  { %168 = vperm.xlu1 %3185, %v3554_v34   ;;  %v188_v55 = vmul.f32 %v186_v51, %v173_v50 }
0x156a   :  { %v177_v42 = vpop.permute.xlu0 %176 }
0x156b   :  { %3187 = vset.pattern.permute.xlu1 %v3282_v12  ;;  %v162_v12 = vrot.slane %v3414_v32, %v3402_v20  ;;  %v189_v3 = vmul.f32 %v186_v51, %v177_v42 }
0x156c   :  { %151 = vperm.xlu1 %3187, %v3567_v35  }
0x156d   :  { %v163_v54 = vmul.f32 %v162_v12, %v142_v49  ;;  %v1130_v31 = vmul.f32 %v3502_v8, %v162_v12 }
0x156f   :  { %v1132_v38 = vadd.f32 %v1131_v33, %v1130_v31 }
0x1570   :  { %156 = vperm.xlu1 %3187, %v137_v45  }
0x1571   :  { %v1133_v27 = vadd.f32 %v1132_v38, %v3422_v37  ;;  %v3692_v38 = vld [vmem:[%s3862_s9] ss:$0 sm:$0xff] }
0x1574   :  { %3188 = vset.pattern.permute.xlu1 %v3283_v17 }
0x1575   :  { %180 = vperm.xlu1 %3188, %v137_v45   ;;  %v223_v45 = vld [vmem:[%s3862_s9] sm:$0x1] }
0x15d0   :  { %v1124_v46 = vpop.permute.xlu1 %1123 }
0x15d1   :  { %v1126_v13 = vmul.f32 %v1124_v46, %v1106_v28 }
0x15d3   :  { %v1135_v47 = vrot.slane %v1126_v13, 6 }
0x15d5   :  { %1136 = vrot.lane.b32.xlu0 %v1135_v47, %s3286_s12 }
0x15e1   :  { %v147_v16 = vpop.permute.xlu1 %146 }
0x15e2   :  { %v164_v52 = vmul.f32 %v162_v12, %v147_v16 }
0x15e4   :  { %v192_v59 = vadd.f32 %v188_v55, %v164_v52 }
0x15e6   :  { %v169_v53 = vpop.permute.xlu1 %168 }
0x15e7   :  { %v187_v56 = vmul.f32 %v186_v51, %v169_v53 }
0x15e9   :  { %v191_v60 = vadd.f32 %v187_v56, %v163_v54 }
0x15eb   :  { %v3597_v62 = vpack.c.bf16 %v192_v59, %v191_v60  ;;  %v152_v23 = vpop.permute.xlu1 %151 }
0x15ec   :  { %v165_v1 = vmul.f32 %v162_v12, %v152_v23 }
0x15ed   :  { %3061 = vmatprep.subr.bf16.mxu1 %v3597_v62  ;;  %3069 = vmatprep.subr.bf16.mxu0 %v3597_v62 }
0x15ee   :  { %3071 = vmatpush1.bf16.msra.mxu0 %v3595_v61  ;;  %3063 = vmatpush1.bf16.msra.mxu1 %v3595_v61  ;;  %v193_v15 = vadd.f32 %v189_v3, %v165_v1 }
0x15ef   :  { %v157_v63 = vpop.permute.xlu1 %156 }
0x15f0   :  { %v166_v4 = vmul.f32 %v162_v12, %v157_v63 }
0x15f4   :  { %v181_v2 = vpop.permute.xlu1 %180 }
0x15f5   :  { %v190_v9 = vmul.f32 %v186_v51, %v181_v2 }
0x15f7   :  { %v194_v18 = vadd.f32 %v190_v9, %v166_v4 }
0x15f9   :  { %v3611_v21 = vpack.c.bf16 %v194_v18, %v193_v15 }
0x15fb   :  { %3065 = vmatprep.subr.bf16.mxu1 %v3611_v21  ;;  %3073 = vmatprep.subr.bf16.mxu0 %v3611_v21 }
0x15fc   :  { %3075 = vmatpush1.bf16.msra.mxu0 %v3609_v19  ;;  %3067 = vmatpush1.bf16.msra.mxu1 %v3609_v19 }
0x15fd   :  { %3083 = vmatprep.subr.bf16.mxu0 %v3597_v62  ;;  %3076 = vmatprep.subr.bf16.mxu1 %v3280_v6 }
0x1647   :  { %v1137_v24 = vpop.permute.xlu0 %1136 }
0x1648   :  { %2736 = vmatmul.mubr.msk.f32.vlgmr.msra.gmra.mrb[8].mxu1 %vm308_vm5, %v1137_v24 }
0x1649   :  { %3078 = vmatpush3.bf16.msra.mxu1 %v3621_v22  ;;  %2928 = vmatprep.mubr.msk.f32.mxu1 %vm3281_vm0, %v3279_v5 }
0x164a   :  { %3079 = vmatprep.subr.bf16.mxu1 %v3280_v6 }
0x164d   :  { %3081 = vmatpush3.bf16.msra.mxu1 %v3625_v25 }
0x164e   :  { %3090 = vmatprep.subr.bf16.mxu1 %v3280_v6 }
0x171b   :  { %v1206_v26 = vpop.f32.mrb[8].mxu1 }
0x171c   :  { %v1211_v28 = vrot.slane %v1206_v26, 2  ;;  %v1208_v29 = vpop.f32.mrb[9].mxu1 }
0x171e   :  { %v1213_v30 = vadd.f32 %v1211_v28, %v1133_v27 }
0x1720   :  { %v1214_v34 = vmul.f32 %v1213_v30, %v3429_v44 }
0x1722   :  { %3223 = vtanh.f32 %v1214_v34 }
0x172c   :  { %v3224_v14 = vpop.eup %3223 }
0x172d   :  { %v1216_v35 = vmul.f32 %v3224_v14, %v3429_v44 }
0x172f   :  { %v1217_v36 = vadd.f32 %v1216_v35, %v3433_v48 }
0x1731   :  { %1220 = vrot.lane.b32.xlu1 %v1217_v36, %s3285_s5  ;;  %v1218_v8 = vmul.f32 %v1217_v36, %v3571_v41 }
0x17a3   :  { %v1221_v7 = vpop.permute.xlu1 %1220 }
0x17a4   :  { %v1223_v39 = vmul.f32 %v1221_v7, %v1217_v36 }
0x17a6   :  { %1225 = vrot.lane.b32.xlu0 %v1223_v39, %s3286_s12 }
0x1818   :  { %v1226_v37 = vpop.permute.xlu0 %1225 }
0x1819   :  { %v1228_v40 = vadd.f32 %v1226_v37, %v1218_v8 }
0x181b   :  { %3225 = vtanh.f32 %v1228_v40 }
0x1825   :  { %v3226_v43 = vpop.eup %3225 }
0x1826   :  { %1231 = vrot.lane.b32.xlu1 %v3226_v43, %s3285_s5 }
0x182a   :  { %235 = vperm.xlu1 %3188, %v223_v45  }
0x1898   :  { %v1232_v46 = vpop.permute.xlu1 %1231 }
0x1899   :  { %v1234_v13 = vmul.f32 %v1232_v46, %v1217_v36 }
0x189b   :  { %v1236_v47 = vrot.slane %v1234_v13, 6 }
0x189d   :  { %1237 = vrot.lane.b32.xlu0 %v1236_v47, %s3286_s12 }
0x18a1   :  { %226 = vperm.xlu0 %3189, %v223_v45  }
0x18a5   :  { %3190 = vset.pattern.permute.xlu0 %v3283_v17 }
0x18a9   :  { %v236_v17 = vpop.permute.xlu1 %235 }
0x18aa   :  { %v241_v16 = vrot.slane %v236_v17, %v3402_v20 }
0x18ac   :  { %v242_v50 = vmul.f32 %v241_v16, %v3414_v32 }
0x18ae   :  { %v244_v52 = vrot.slane %v242_v50, 1 }
0x190f   :  { %v1238_v41 = vpop.permute.xlu0 %1237 }
0x1910   :  { %2737 = vmatmul.mubr.msk.f32.vlgmr.msra.gmra.mrb[10].mxu0 %vm308_vm5, %v1238_v41  ;;  %2929 = vmatmul.mubr.msk.f32.vlgmr.msra.gmra.mrb[10].mxu1 %vm308_vm5, %v1238_v41 }
0x1911   :  { %3085 = vmatpush1.bf16.msra.mxu0 %v3595_v61  ;;  %3092 = vmatpush3.bf16.msra.mxu1 %v3621_v22 }
0x1912   :  { %3087 = vmatprep.subr.bf16.mxu0 %v3611_v21  ;;  %3093 = vmatprep.subr.bf16.mxu1 %v3280_v6 }
0x1913   :  { %1496 = vmatprep.mubr.f32.mxu0 %v3279_v5  ;;  %2939 = vmatprep.mubr.msk.f32.mxu1 %vm3281_vm0, %v3279_v5 }
0x1915   :  { %3089 = vmatpush1.bf16.msra.mxu0 %v3609_v19  ;;  %3095 = vmatpush3.bf16.msra.mxu1 %v3625_v25 }
0x1916   :  { %3097 = vmatprep.subr.bf16.mxu0 %v3597_v62  ;;  %3104 = vmatprep.subr.bf16.mxu1 %v3280_v6 }
0x1920   :  { %v227_v49 = vpop.permute.xlu0 %226 }
0x1921   :  { %v232_v12 = vrot.slane %v227_v49, %v3402_v20 }
0x1923   :  { %v233_v51 = vmul.f32 %v232_v12, %v3414_v32  ;;  %v3709_v12 = vld [vmem:[%s3855_s2] sm:$0xff] }
0x1925   :  { %v246_v53 = vadd.f32 %v244_v52, %v233_v51 }
0x1927   :  { %v3666_v59 = vrot.slane %v246_v53, %v3402_v20 }
0x19e3   :  { %v1307_v54 = vpop.f32.mrb[10].mxu0  ;;  %v1378_v55 = vpop.f32.mrb[10].mxu1 }
0x19e4   :  { %v1309_v56 = vpop.f32.mrb[11].mxu0  ;;  %v2930_v57 = vpop.f32.mrb[11].mxu1  ;;  %v1402_v23 = vrot.slane %v1307_v54, 2  ;;  %v1382_v26 = vadd.f32 %v3692_v38, %v1378_v55 }
0x19e5   :  { %v1397_v58 = vrot.slane %v1309_v56, 2 }
0x19e7   :  { %v1399_v60 = vadd.f32 %v1397_v58, %v1133_v27  ;;  %v1384_v27 = vrot.slane %v1382_v26, 2 }
0x19e9   :  { %v1400_v63 = vadd.f32 %v1399_v60, %v3666_v59  ;;  %v1386_v30 = vadd.f32 %v1384_v27, %v3488_v0  ;;  %v3701_v0 = vld [vmem:[%s3854_s1] sm:$0x3] }
0x19eb   :  { %v1404_v42 = vadd.f32 %v1402_v23, %v1400_v63  ;;  %v1388_v8 = vmul.f32 0.4, %v1386_v30 }
0x19ed   :  { %v1405_v1 = vmul.f32 %v1404_v42, %v3429_v44  ;;  %v1390_v13 = vrot.slane %v1388_v8, 6 }
0x19ef   :  { %3227 = vtanh.f32 %v1405_v1  ;;  %v1392_v49 = vadd.f32 %v1390_v13, %v3701_v0 }
0x19f1   :  { %v1393_v51 = vsub.f32 %v3709_v12, %v1392_v49 }
0x19f3   :  { %v1394_v54 = vmul.f32 %v1393_v51, %v1393_v51 }
0x19f9   :  { %v3228_v2 = vpop.eup %3227 }
0x19fa   :  { %v1407_v32 = vmul.f32 %v3228_v2, %v3429_v44 }
0x19fc   :  { %v1408_v3 = vadd.f32 %v1407_v32, %v3433_v48 }
0x19fe   :  { %1411 = vrot.lane.b32.xlu1 %v1408_v3, %s3285_s5  ;;  %v1409_v20 = vmul.f32 %v1408_v3, %v1228_v40 }
0x1a70   :  { %v1412_v4 = vpop.permute.xlu1 %1411 }
0x1a71   :  { %v1414_v9 = vmul.f32 %v1412_v4, %v1408_v3 }
0x1a73   :  { %1416 = vrot.lane.b32.xlu1 %v1414_v9, %s3286_s12 }
0x1ae5   :  { %v1417_v10 = vpop.permute.xlu1 %1416 }
0x1ae6   :  { %v1419_v11 = vadd.f32 %v1417_v10, %v1409_v20 }
0x1ae8   :  { %3229 = vtanh.f32 %v1419_v11 }
0x1af2   :  { %v3230_v15 = vpop.eup %3229 }
0x1af3   :  { %1422 = vrot.lane.b32.xlu0 %v3230_v15, %s3285_s5 }
0x1b65   :  { %v1423_v18 = vpop.permute.xlu0 %1422 }
0x1b66   :  { %v1425_v24 = vmul.f32 %v1423_v18, %v1408_v3 }
0x1b68   :  { %v1427_v33 = vrot.slane %v1425_v24, 6 }
0x1b6a   :  { %1428 = vrot.lane.b32.xlu1 %v1427_v33, %s3286_s12 }
0x1bdc   :  { %v1429_v31 = vpop.permute.xlu1 %1428 }
0x1bdd   :  { %2739 = vmatmul.mubr.msk.f32.vlgmr.msra.gmra.mrb[12].mxu0 %vm308_vm5, %v1429_v31  ;;  %2940 = vmatmul.mubr.msk.f32.vlgmr.msra.gmra.mrb[12].mxu1 %vm308_vm5, %v1429_v31 }
0x1bde   :  { %3099 = vmatpush1.bf16.msra.mxu0 %v3595_v61  ;;  %3106 = vmatpush3.bf16.msra.mxu1 %v3621_v22 }
0x1bdf   :  { %3101 = vmatprep.subr.bf16.mxu0 %v3611_v21  ;;  %3107 = vmatprep.subr.bf16.mxu1 %v3280_v6 }
0x1be0   :  { %1693 = vmatprep.mubr.f32.mxu0 %v3279_v5  ;;  %2950 = vmatprep.mubr.msk.f32.mxu1 %vm3281_vm0, %v3279_v5 }
0x1be2   :  { %3103 = vmatpush1.bf16.msra.mxu0 %v3609_v19  ;;  %3109 = vmatpush3.bf16.msra.mxu1 %v3625_v25 }
0x1be3   :  { %3111 = vmatprep.subr.bf16.mxu0 %v3597_v62  ;;  %3118 = vmatprep.subr.bf16.mxu1 %v3280_v6 }
0x1cb0   :  { %v1498_v28 = vpop.f32.mrb[12].mxu0  ;;  %v1569_v29 = vpop.f32.mrb[12].mxu1 }
0x1cb1   :  { %v1573_v34 = vadd.f32 %v3692_v38, %v1569_v29  ;;  %v1500_v14 = vpop.f32.mrb[13].mxu0  ;;  %v2941_v35 = vpop.f32.mrb[13].mxu1  ;;  %v1599_v40 = vrot.slane %v1498_v28, 2 }
0x1cb2   :  { %v1594_v36 = vrot.slane %v1500_v14, 2 }
0x1cb3   :  { %v1575_v7 = vrot.slane %v1573_v34, 2 }
0x1cb4   :  { %v1596_v39 = vadd.f32 %v1594_v36, %v1400_v63 }
0x1cb5   :  { %v1577_v37 = vadd.f32 %v1575_v7, %v1386_v30 }
0x1cb6   :  { %v1597_v43 = vadd.f32 %v1596_v39, %v3666_v59 }
0x1cb7   :  { %v1578_v45 = vadd.f32 %v1577_v37, %v1386_v30 }
0x1cb8   :  { %v1601_v46 = vadd.f32 %v1599_v40, %v1597_v43 }
0x1cb9   :  { %v1579_v47 = vmul.f32 0.4, %v1578_v45 }
0x1cba   :  { %v1602_v41 = vmul.f32 %v1601_v46, %v3429_v44 }
0x1cbb   :  { %v1581_v17 = vrot.slane %v1579_v47, 6 }
0x1cbc   :  { %3231 = vtanh.f32 %v1602_v41 }
0x1cbd   :  { %v1583_v16 = vadd.f32 %v1581_v17, %v3701_v0 }
0x1cbf   :  { %v1585_v50 = vrot.slane %v1583_v16, 6 }
0x1cc1   :  { %v1587_v52 = vsub.f32 %v3709_v12, %v1585_v50 }
0x1cc3   :  { %v1588_v53 = vmul.f32 %v1587_v52, %v1587_v52 }
0x1cc5   :  { %v1590_v55 = vrot.slane %v1588_v53, 2 }
0x1cc6   :  { %v3232_v56 = vpop.eup %3231 }
0x1cc7   :  { %v1604_v57 = vmul.f32 %v3232_v56, %v3429_v44  ;;  %v1592_v58 = vadd.f32 %v1590_v55, %v1394_v54 }
0x1cc9   :  { %v1605_v60 = vadd.f32 %v1604_v57, %v3433_v48 }
0x1ccb   :  { %1608 = vrot.lane.b32.xlu0 %v1605_v60, %s3285_s5  ;;  %v1606_v42 = vmul.f32 %v1605_v60, %v1419_v11 }
0x1d3d   :  { %v1609_v23 = vpop.permute.xlu0 %1608 }
0x1d3e   :  { %v1611_v63 = vmul.f32 %v1609_v23, %v1605_v60 }
0x1d40   :  { %1613 = vrot.lane.b32.xlu1 %v1611_v63, %s3286_s12 }
0x1db2   :  { %v1614_v1 = vpop.permute.xlu1 %1613 }
0x1db3   :  { %v1616_v2 = vadd.f32 %v1614_v1, %v1606_v42 }
0x1db5   :  { %3233 = vtanh.f32 %v1616_v2 }
0x1dbf   :  { %v3234_v32 = vpop.eup %3233 }
0x1dc0   :  { %1619 = vrot.lane.b32.xlu0 %v3234_v32, %s3285_s5 }
0x1e32   :  { %v1620_v3 = vpop.permute.xlu0 %1619 }
0x1e33   :  { %v1622_v4 = vmul.f32 %v1620_v3, %v1605_v60 }
0x1e35   :  { %v1624_v9 = vrot.slane %v1622_v4, 6 }
0x1e37   :  { %1625 = vrot.lane.b32.xlu1 %v1624_v9, %s3286_s12 }
0x1ea9   :  { %v1626_v20 = vpop.permute.xlu1 %1625 }
0x1eaa   :  { %2741 = vmatmul.mubr.msk.f32.vlgmr.msra.gmra.mrb[14].mxu0 %vm308_vm5, %v1626_v20  ;;  %2951 = vmatmul.mubr.msk.f32.vlgmr.msra.gmra.mrb[14].mxu1 %vm308_vm5, %v1626_v20 }
0x1eab   :  { %3113 = vmatpush1.bf16.msra.mxu0 %v3595_v61  ;;  %3120 = vmatpush3.bf16.msra.mxu1 %v3621_v22 }
0x1eac   :  { %3115 = vmatprep.subr.bf16.mxu0 %v3611_v21  ;;  %3121 = vmatprep.subr.bf16.mxu1 %v3280_v6 }
0x1ead   :  { %1890 = vmatprep.mubr.f32.mxu0 %v3279_v5  ;;  %2961 = vmatprep.mubr.msk.f32.mxu1 %vm3281_vm0, %v3279_v5 }
0x1eaf   :  { %3117 = vmatpush1.bf16.msra.mxu0 %v3609_v19  ;;  %3123 = vmatpush3.bf16.msra.mxu1 %v3625_v25 }
0x1eb0   :  { %3125 = vmatprep.subr.bf16.mxu0 %v3597_v62  ;;  %3132 = vmatprep.subr.bf16.mxu1 %v3280_v6 }
0x1f7d   :  { %v1695_v10 = vpop.f32.mrb[14].mxu0  ;;  %v1766_v11 = vpop.f32.mrb[14].mxu1 }
0x1f7e   :  { %v1770_v15 = vadd.f32 %v3692_v38, %v1766_v11  ;;  %v1697_v18 = vpop.f32.mrb[15].mxu0  ;;  %v2952_v24 = vpop.f32.mrb[15].mxu1  ;;  %v1796_v28 = vrot.slane %v1695_v10, 2 }
0x1f7f   :  { %v1791_v33 = vrot.slane %v1697_v18, 2 }
0x1f80   :  { %v1772_v31 = vrot.slane %v1770_v15, 2 }
0x1f81   :  { %v1793_v26 = vadd.f32 %v1791_v33, %v1597_v43 }
0x1f82   :  { %v1774_v27 = vadd.f32 %v1772_v31, %v1577_v37 }
0x1f83   :  { %v1794_v29 = vadd.f32 %v1793_v26, %v3666_v59 }
0x1f84   :  { %v1775_v30 = vadd.f32 %v1774_v27, %v1578_v45 }
0x1f85   :  { %v1798_v34 = vadd.f32 %v1796_v28, %v1794_v29 }
0x1f86   :  { %v1776_v14 = vmul.f32 0.4, %v1775_v30 }
0x1f87   :  { %v1799_v35 = vmul.f32 %v1798_v34, %v3429_v44 }
0x1f88   :  { %v1778_v36 = vrot.slane %v1776_v14, 6 }
0x1f89   :  { %3235 = vtanh.f32 %v1799_v35 }
0x1f8a   :  { %v1780_v7 = vadd.f32 %v1778_v36, %v3701_v0 }
0x1f8c   :  { %v1782_v39 = vrot.slane %v1780_v7, 4 }
0x1f8e   :  { %v1784_v8 = vsub.f32 %v3709_v12, %v1782_v39 }
0x1f90   :  { %v1785_v40 = vmul.f32 %v1784_v8, %v1784_v8 }
0x1f92   :  { %v1787_v46 = vrot.slane %v1785_v40, 4 }
0x1f93   :  { %v3236_v13 = vpop.eup %3235 }
0x1f94   :  { %v1801_v37 = vmul.f32 %v3236_v13, %v3429_v44  ;;  %v1789_v43 = vadd.f32 %v1787_v46, %v1592_v58 }
0x1f96   :  { %v1802_v47 = vadd.f32 %v1801_v37, %v3433_v48 }
0x1f98   :  { %1805 = vrot.lane.b32.xlu0 %v1802_v47, %s3285_s5  ;;  %v1803_v17 = vmul.f32 %v1802_v47, %v1616_v2 }
0x200a   :  { %v1806_v45 = vpop.permute.xlu0 %1805 }
0x200b   :  { %v1808_v41 = vmul.f32 %v1806_v45, %v1802_v47 }
0x200d   :  { %1810 = vrot.lane.b32.xlu1 %v1808_v41, %s3286_s12 }
0x207f   :  { %v1811_v49 = vpop.permute.xlu1 %1810 }
0x2080   :  { %v1813_v16 = vadd.f32 %v1811_v49, %v1803_v17 }
0x2082   :  { %3237 = vtanh.f32 %v1813_v16 }
0x208c   :  { %v3238_v50 = vpop.eup %3237 }
0x208d   :  { %1816 = vrot.lane.b32.xlu0 %v3238_v50, %s3285_s5 }
0x20ff   :  { %v1817_v51 = vpop.permute.xlu0 %1816 }
0x2100   :  { %v1819_v52 = vmul.f32 %v1817_v51, %v1802_v47 }
0x2102   :  { %v1821_v53 = vrot.slane %v1819_v52, 6 }
0x2104   :  { %1822 = vrot.lane.b32.xlu1 %v1821_v53, %s3286_s12 }
0x2176   :  { %v1823_v54 = vpop.permute.xlu1 %1822 }
0x2177   :  { %2743 = vmatmul.mubr.msk.f32.vlgmr.msra.gmra.mrb[16].mxu0 %vm308_vm5, %v1823_v54  ;;  %2962 = vmatmul.mubr.msk.f32.vlgmr.msra.gmra.mrb[16].mxu1 %vm308_vm5, %v1823_v54  ;;  %v3786_v54 = vld [vmem:[%s3855_s2 + $0x8] sm:$0xff]  ;;  %s3287_s2 = smov [#allocation3]  }
0x2178   :  { %3127 = vmatpush1.bf16.msra.mxu0 %v3595_v61  ;;  %3134 = vmatpush3.bf16.msra.mxu1 %v3621_v22 }
0x2179   :  { %3129 = vmatprep.subr.bf16.mxu0 %v3611_v21  ;;  %3135 = vmatprep.subr.bf16.mxu1 %v3280_v6 }
0x217a   :  { %2087 = vmatprep.mubr.f32.mxu0 %v3279_v5  ;;  %2972 = vmatprep.mubr.msk.f32.mxu1 %vm3281_vm0, %v3279_v5 }
0x217c   :  { %3131 = vmatpush1.bf16.msra.mxu0 %v3609_v19  ;;  %3137 = vmatpush3.bf16.msra.mxu1 %v3625_v25 }
0x217d   :  { %3139 = vmatprep.subr.bf16.mxu0 %v3597_v62  ;;  %3146 = vmatprep.subr.bf16.mxu1 %v3280_v6 }
0x224a   :  { %v1892_v55 = vpop.f32.mrb[16].mxu0  ;;  %v1963_v56 = vpop.f32.mrb[16].mxu1 }
0x224b   :  { %v1967_v57 = vadd.f32 %v3692_v38, %v1963_v56  ;;  %v1894_v58 = vpop.f32.mrb[17].mxu0  ;;  %v2963_v60 = vpop.f32.mrb[17].mxu1  ;;  %v1993_v2 = vrot.slane %v1892_v55, 2 }
0x224c   :  { %v1988_v23 = vrot.slane %v1894_v58, 2 }
0x224d   :  { %v1969_v63 = vrot.slane %v1967_v57, 2 }
0x224e   :  { %v1990_v42 = vadd.f32 %v1988_v23, %v1794_v29 }
0x224f   :  { %v1971_v1 = vadd.f32 %v1969_v63, %v1774_v27 }
0x2250   :  { %v1991_v32 = vadd.f32 %v1990_v42, %v3666_v59 }
0x2251   :  { %v1972_v3 = vadd.f32 %v1971_v1, %v1775_v30 }
0x2252   :  { %v1995_v4 = vadd.f32 %v1993_v2, %v1991_v32 }
0x2253   :  { %v1973_v9 = vmul.f32 0.4, %v1972_v3 }
0x2254   :  { %v1996_v20 = vmul.f32 %v1995_v4, %v3429_v44 }
0x2255   :  { %v1975_v10 = vrot.slane %v1973_v9, 6 }
0x2256   :  { %3239 = vtanh.f32 %v1996_v20 }
0x2257   :  { %v1977_v11 = vadd.f32 %v1975_v10, %v3701_v0 }
0x2259   :  { %v1979_v15 = vrot.slane %v1977_v11, 2 }
0x225b   :  { %v1981_v18 = vsub.f32 %v3709_v12, %v1979_v15 }
0x225d   :  { %v1982_v24 = vmul.f32 %v1981_v18, %v1981_v18 }
0x225f   :  { %v1984_v33 = vrot.slane %v1982_v24, 6 }
0x2260   :  { %v3240_v31 = vpop.eup %3239 }
0x2261   :  { %v1998_v26 = vmul.f32 %v3240_v31, %v3429_v44  ;;  %v1986_v27 = vadd.f32 %v1984_v33, %v1789_v43 }
0x2263   :  { %v1999_v28 = vadd.f32 %v1998_v26, %v3433_v48 }
0x2265   :  { %2002 = vrot.lane.b32.xlu0 %v1999_v28, %s3285_s5  ;;  %v2000_v34 = vmul.f32 %v1999_v28, %v1813_v16 }
0x22d7   :  { %v2003_v29 = vpop.permute.xlu0 %2002 }
0x22d8   :  { %v2005_v30 = vmul.f32 %v2003_v29, %v1999_v28 }
0x22da   :  { %2007 = vrot.lane.b32.xlu1 %v2005_v30, %s3286_s12 }
0x234c   :  { %v2008_v14 = vpop.permute.xlu1 %2007 }
0x234d   :  { %v2010_v35 = vadd.f32 %v2008_v14, %v2000_v34 }
0x234f   :  { %3241 = vtanh.f32 %v2010_v35 }
0x2359   :  { %v3242_v36 = vpop.eup %3241 }
0x235a   :  { %2013 = vrot.lane.b32.xlu0 %v3242_v36, %s3285_s5 }
0x23cc   :  { %v2014_v12 = vpop.permute.xlu0 %2013 }
0x23cd   :  { %v2016_v7 = vmul.f32 %v2014_v12, %v1999_v28 }
0x23cf   :  { %v2018_v39 = vrot.slane %v2016_v7, 6 }
0x23d1   :  { %2019 = vrot.lane.b32.xlu1 %v2018_v39, %s3286_s12 }
0x2443   :  { %v2020_v8 = vpop.permute.xlu1 %2019 }
0x2444   :  { %2745 = vmatmul.mubr.msk.f32.vlgmr.msra.gmra.mrb[18].mxu0 %vm308_vm5, %v2020_v8  ;;  %2973 = vmatmul.mubr.msk.f32.vlgmr.msra.gmra.mrb[18].mxu1 %vm308_vm5, %v2020_v8 }
0x2445   :  { %3141 = vmatpush1.bf16.msra.mxu0 %v3595_v61  ;;  %3148 = vmatpush3.bf16.msra.mxu1 %v3621_v22 }
0x2446   :  { %3143 = vmatprep.subr.bf16.mxu0 %v3611_v21  ;;  %3149 = vmatprep.subr.bf16.mxu1 %v3280_v6 }
0x2447   :  { %2278 = vmatprep.mubr.f32.mxu0 %v3279_v5  ;;  %2983 = vmatprep.mubr.msk.f32.mxu1 %vm3281_vm0, %v3279_v5 }
0x2449   :  { %3145 = vmatpush1.bf16.msra.mxu0 %v3609_v19  ;;  %3151 = vmatpush3.bf16.msra.mxu1 %v3625_v25 }
0x244a   :  { %3153 = vmatprep.subr.bf16.mxu0 %v3597_v62  ;;  %3160 = vmatprep.subr.bf16.mxu1 %v3280_v6 }
0x2517   :  { %v2089_v40 = vpop.f32.mrb[18].mxu0  ;;  %v2160_v46 = vpop.f32.mrb[18].mxu1 }
0x2518   :  { %v2164_v13 = vadd.f32 %v3692_v38, %v2160_v46  ;;  %v2091_v37 = vpop.f32.mrb[19].mxu0  ;;  %v2974_v43 = vpop.f32.mrb[19].mxu1  ;;  %v2184_v49 = vrot.slane %v2089_v40, 2 }
0x2519   :  { %v2179_v47 = vrot.slane %v2091_v37, 2 }
0x251a   :  { %v2166_v45 = vrot.slane %v2164_v13, 2 }
0x251b   :  { %v2181_v41 = vadd.f32 %v2179_v47, %v1991_v32 }
0x251c   :  { %v2168_v17 = vadd.f32 %v2166_v45, %v1971_v1 }
0x251d   :  { %v2182_v16 = vadd.f32 %v2181_v41, %v3666_v59 }
0x251e   :  { %v2169_v50 = vadd.f32 %v2168_v17, %v1972_v3 }
0x251f   :  { %v2186_v51 = vadd.f32 %v2184_v49, %v2182_v16 }
0x2520   :  { %v2170_v52 = vmul.f32 0.4, %v2169_v50 }
0x2521   :  { %v2187_v62 = vmul.f32 %v2186_v51, %v3429_v44 }
0x2522   :  { %v2172_v53 = vrot.slane %v2170_v52, 6 }
0x2523   :  { %3243 = vtanh.f32 %v2187_v62 }
0x2524   :  { %v2174_v55 = vadd.f32 %v2172_v53, %v3701_v0 }
0x2526   :  { %v2175_v56 = vsub.f32 %v3786_v54, %v2174_v55 }
0x2528   :  { %v2176_v57 = vmul.f32 %v2175_v56, %v2175_v56 }
0x252a   :  { %v2177_v58 = vadd.f32 %v2176_v57, %v1986_v27 }
0x252d   :  { %v3244_v60 = vpop.eup %3243 }
0x252e   :  { %v2189_v23 = vmul.f32 %v3244_v60, %v3429_v44 }
0x2530   :  { %v2190_v63 = vadd.f32 %v2189_v23, %v3433_v48 }
0x2532   :  { %2193 = vrot.lane.b32.xlu0 %v2190_v63, %s3285_s5  ;;  %v2191_v2 = vmul.f32 %v2190_v63, %v2010_v35 }
0x25a4   :  { %v2194_v42 = vpop.permute.xlu0 %2193 }
0x25a5   :  { %v2196_v1 = vmul.f32 %v2194_v42, %v2190_v63 }
0x25a7   :  { %2198 = vrot.lane.b32.xlu1 %v2196_v1, %s3286_s12 }
0x2619   :  { %v2199_v32 = vpop.permute.xlu1 %2198 }
0x261a   :  { %v2201_v3 = vadd.f32 %v2199_v32, %v2191_v2 }
0x261c   :  { %3245 = vtanh.f32 %v2201_v3 }
0x2626   :  { %v3246_v4 = vpop.eup %3245 }
0x2627   :  { %2204 = vrot.lane.b32.xlu0 %v3246_v4, %s3285_s5 }
0x2699   :  { %v2205_v9 = vpop.permute.xlu0 %2204 }
0x269a   :  { %v2207_v20 = vmul.f32 %v2205_v9, %v2190_v63 }
0x269c   :  { %v2209_v10 = vrot.slane %v2207_v20, 6 }
0x269e   :  { %2210 = vrot.lane.b32.xlu1 %v2209_v10, %s3286_s12 }
0x2710   :  { %v2211_v11 = vpop.permute.xlu1 %2210 }
0x2711   :  { %2747 = vmatmul.mubr.msk.f32.vlgmr.msra.gmra.mrb[20].mxu0 %vm308_vm5, %v2211_v11  ;;  %2984 = vmatmul.mubr.msk.f32.vlgmr.msra.gmra.mrb[20].mxu1 %vm308_vm5, %v2211_v11 }
0x2712   :  { %3155 = vmatpush1.bf16.msra.mxu0 %v3595_v61  ;;  %3162 = vmatpush3.bf16.msra.mxu1 %v3621_v22 }
0x2713   :  { %3157 = vmatprep.subr.bf16.mxu0 %v3611_v21  ;;  %3163 = vmatprep.subr.bf16.mxu1 %v3280_v6 }
0x2714   :  { %2475 = vmatprep.mubr.f32.mxu0 %v3279_v5  ;;  %2994 = vmatprep.mubr.msk.f32.mxu1 %vm3281_vm0, %v3279_v5 }
0x2716   :  { %3159 = vmatpush1.bf16.msra.mxu0 %v3609_v19  ;;  %3165 = vmatpush3.bf16.msra.mxu1 %v3625_v25 }
0x2717   :  { %3166 = vmatprep.subr.bf16.mxu0 %v3280_v6 }
0x27e4   :  { %v2280_v15 = vpop.f32.mrb[20].mxu0  ;;  %v2351_v18 = vpop.f32.mrb[20].mxu1 }
0x27e5   :  { %v2355_v61 = vadd.f32 %v3692_v38, %v2351_v18  ;;  %v2282_v24 = vpop.f32.mrb[21].mxu0  ;;  %v2985_v33 = vpop.f32.mrb[21].mxu1  ;;  %v2381_v28 = vrot.slane %v2280_v15, 2 }
0x27e6   :  { %v2376_v21 = vrot.slane %v2282_v24, 2 }
0x27e7   :  { %v2357_v31 = vrot.slane %v2355_v61, 2 }
0x27e8   :  { %v2378_v26 = vadd.f32 %v2376_v21, %v2182_v16 }
0x27e9   :  { %v2359_v27 = vadd.f32 %v2357_v31, %v2168_v17 }
0x27ea   :  { %v2379_v29 = vadd.f32 %v2378_v26, %v3666_v59 }
0x27eb   :  { %v2360_v30 = vadd.f32 %v2359_v27, %v2169_v50 }
0x27ec   :  { %v2383_v34 = vadd.f32 %v2381_v28, %v2379_v29 }
0x27ed   :  { %v2361_v19 = vmul.f32 0.4, %v2360_v30 }
0x27ee   :  { %v2384_v14 = vmul.f32 %v2383_v34, %v3429_v44 }
0x27ef   :  { %v2363_v35 = vrot.slane %v2361_v19, 6 }
0x27f0   :  { %3247 = vtanh.f32 %v2384_v14 }
0x27f1   :  { %v2365_v36 = vadd.f32 %v2363_v35, %v3701_v0 }
0x27f3   :  { %v2367_v12 = vrot.slane %v2365_v36, 6 }
0x27f5   :  { %v2369_v7 = vsub.f32 %v3786_v54, %v2367_v12 }
0x27f7   :  { %v2370_v39 = vmul.f32 %v2369_v7, %v2369_v7 }
0x27f9   :  { %v2372_v8 = vrot.slane %v2370_v39, 2 }
0x27fa   :  { %v3248_v40 = vpop.eup %3247 }
0x27fb   :  { %v2386_v46 = vmul.f32 %v3248_v40, %v3429_v44  ;;  %v2374_v13 = vadd.f32 %v2372_v8, %v2177_v58 }
0x27fd   :  { %v2387_v37 = vadd.f32 %v2386_v46, %v3433_v48 }
0x27ff   :  { %2390 = vrot.lane.b32.xlu0 %v2387_v37, %s3285_s5  ;;  %v2388_v45 = vmul.f32 %v2387_v37, %v2201_v3 }
0x2871   :  { %v2391_v43 = vpop.permute.xlu0 %2390 }
0x2872   :  { %v2393_v47 = vmul.f32 %v2391_v43, %v2387_v37 }
0x2874   :  { %2395 = vrot.lane.b32.xlu1 %v2393_v47, %s3286_s12 }
0x28e6   :  { %v2396_v41 = vpop.permute.xlu1 %2395 }
0x28e7   :  { %v2398_v17 = vadd.f32 %v2396_v41, %v2388_v45 }
0x28e9   :  { %3249 = vtanh.f32 %v2398_v17 }
0x28f3   :  { %v3250_v49 = vpop.eup %3249 }
0x28f4   :  { %2401 = vrot.lane.b32.xlu0 %v3250_v49, %s3285_s5 }
0x2966   :  { %v2402_v16 = vpop.permute.xlu0 %2401 }
0x2967   :  { %v2404_v50 = vmul.f32 %v2402_v16, %v2387_v37 }
0x2969   :  { %v2406_v51 = vrot.slane %v2404_v50, 6 }
0x296b   :  { %2407 = vrot.lane.b32.xlu1 %v2406_v51, %s3286_s12 }
0x29dd   :  { %v2408_v52 = vpop.permute.xlu1 %2407 }
0x29de   :  { %2749 = vmatmul.mubr.msk.f32.vlgmr.msra.gmra.mrb[22].mxu0 %vm308_vm5, %v2408_v52  ;;  %2995 = vmatmul.mubr.msk.f32.vlgmr.msra.gmra.mrb[22].mxu1 %vm308_vm5, %v2408_v52 }
0x29df   :  { %3168 = vmatpush3.bf16.msra.mxu0 %v3621_v22  ;;  %3005 = vmatprep.mubr.msk.f32.mxu0 %vm3281_vm0, %v3279_v5 }
0x29e0   :  { %3169 = vmatprep.subr.bf16.mxu0 %v3280_v6 }
0x29e3   :  { %3171 = vmatpush3.bf16.msra.mxu0 %v3625_v25 }
0x2ab1   :  { %v2477_v62 = vpop.f32.mrb[22].mxu0  ;;  %v2548_v53 = vpop.f32.mrb[22].mxu1 }
0x2ab2   :  { %v2552_v55 = vadd.f32 %v3692_v38, %v2548_v53  ;;  %v2479_v56 = vpop.f32.mrb[23].mxu0  ;;  %v2996_v57 = vpop.f32.mrb[23].mxu1  ;;  %v2578_v42 = vrot.slane %v2477_v62, 2 }
0x2ab3   :  { %v2573_v58 = vrot.slane %v2479_v56, 2 }
0x2ab4   :  { %v2554_v60 = vrot.slane %v2552_v55, 2 }
0x2ab5   :  { %v2575_v23 = vadd.f32 %v2573_v58, %v2379_v29 }
0x2ab6   :  { %v2556_v63 = vadd.f32 %v2554_v60, %v2359_v27 }
0x2ab7   :  { %v2576_v22 = vadd.f32 %v2575_v23, %v3666_v59 }
0x2ab8   :  { %v2557_v1 = vadd.f32 %v2556_v63, %v2360_v30 }
0x2ab9   :  { %v2580_v2 = vadd.f32 %v2578_v42, %v2576_v22 }
0x2aba   :  { %v2558_v5 = vmul.f32 0.4, %v2557_v1 }
0x2abb   :  { %v2581_v6 = vmul.f32 %v2580_v2, %v3429_v44 }
0x2abc   :  { %v2560_v32 = vrot.slane %v2558_v5, 6 }
0x2abd   :  { %3251 = vtanh.f32 %v2581_v6 }
0x2abe   :  { %v2562_v25 = vadd.f32 %v2560_v32, %v3701_v0 }
0x2ac0   :  { %v2564_v3 = vrot.slane %v2562_v25, 4 }
0x2ac2   :  { %v2566_v4 = vsub.f32 %v3786_v54, %v2564_v3 }
0x2ac4   :  { %v2567_v9 = vmul.f32 %v2566_v4, %v2566_v4 }
0x2ac6   :  { %v2569_v20 = vrot.slane %v2567_v9, 4 }
0x2ac7   :  { %v3252_v10 = vpop.eup %3251 }
0x2ac8   :  { %v2583_v11 = vmul.f32 %v3252_v10, %v3429_v44  ;;  %v2571_v15 = vadd.f32 %v2569_v20, %v2374_v13 }
0x2aca   :  { %v2584_v59 = vadd.f32 %v2583_v11, %v3433_v48 }
0x2acc   :  { %2587 = vrot.lane.b32.xlu0 %v2584_v59, %s3285_s5  ;;  %v2585_v24 = vmul.f32 %v2584_v59, %v2398_v17 }
0x2b3e   :  { %v2588_v18 = vpop.permute.xlu0 %2587 }
0x2b3f   :  { %v2590_v61 = vmul.f32 %v2588_v18, %v2584_v59 }
0x2b41   :  { %2592 = vrot.lane.b32.xlu1 %v2590_v61, %s3286_s12 }
0x2bb3   :  { %v2593_v33 = vpop.permute.xlu1 %2592 }
0x2bb4   :  { %v2595_v21 = vadd.f32 %v2593_v33, %v2585_v24 }
0x2bb6   :  { %3253 = vtanh.f32 %v2595_v21 }
0x2bc0   :  { %v3254_v31 = vpop.eup %3253 }
0x2bc1   :  { %2598 = vrot.lane.b32.xlu0 %v3254_v31, %s3285_s5  ;;  %s2719_s5 = sshll.u32 %s3287_s2, 4  ;;  %s2720_s5 = int_to_ptr.vmem [resolvable:$true] %s2719_s5 }
0x2bc2   :  { %s3259_s14 = scalar_lea.vmem %s2720_s5, 32  ;;  %p3260_p1 = scmp.lt.s32.totalorder %s2720_s5, %s2720_s5 }
0x2c33   :  { %v2599_v26 = vpop.permute.xlu0 %2598 }
0x2c34   :  { %v2601_v27 = vmul.f32 %v2599_v26, %v2584_v59 }
0x2c36   :  { %v2603_v28 = vrot.slane %v2601_v27, 6 }
0x2c38   :  { %2604 = vrot.lane.b32.xlu1 %v2603_v28, %s3286_s12  ;;  %s3255_s12 = scalar_lea.vmem %s2720_s5, 16 }
0x2c39   :  { %p3256_p0 = scmp.ne.s32.totalorder %s2720_s5, %s3255_s12  ;;  %p3261_p2 = scmp.lt.s32.totalorder %s3259_s14, %s3255_s12 }
0x2c3b   :  { %p3262_p3 = por %p3261_p2, %p3260_p1 }
0x2c3d   :  { %p3263_p4 = pnand %p3262_p3, %p3256_p0 }
0x2caa   :  { %v2605_v44 = vpop.permute.xlu1 %2604 }
0x2cab   :  { %3006 = vmatmul.mubr.msk.f32.vlgmr.msra.gmra.mrb[24].mxu0 %vm308_vm5, %v2605_v44 }
0x2d7e   :  { %v2674_v48 = vpop.f32.mrb[24].mxu0 }
0x2d7f   :  { %v2678_v29 = vadd.f32 %v3692_v38, %v2674_v48  ;;  %v3007_v30 = vpop.f32.mrb[25].mxu0 }
0x2d81   :  { %v2680_v34 = vrot.slane %v2678_v29, 2 }
0x2d83   :  { %v2682_v19 = vadd.f32 %v2680_v34, %v2556_v63 }
0x2d85   :  { %v2683_v14 = vadd.f32 %v2682_v19, %v2557_v1 }
0x2d87   :  { %v2684_v35 = vmul.f32 0.4, %v2683_v14 }
0x2d89   :  { %v2686_v36 = vrot.slane %v2684_v35, 6 }
0x2d8b   :  { %v2688_v12 = vadd.f32 %v2686_v36, %v3701_v0 }
0x2d8d   :  { %v2690_v7 = vrot.slane %v2688_v12, 2 }
0x2d8f   :  { %v2692_v39 = vsub.f32 %v3786_v54, %v2690_v7 }
0x2d91   :  { %v2693_v8 = vmul.f32 %v2692_v39, %v2692_v39 }
0x2d93   :  { %v2695_v40 = vrot.slane %v2693_v8, 6 }
0x2d95   :  { %v2697_v46 = vadd.f32 %v2695_v40, %v2571_v15 }
0x2d97   :  { %v2699_v13 = vsel %vm2698_vm6, %v2697_v46, 0.0 }
0x2d98   :  { %2700 = vadd.xlane.f32.xlu0 %v2699_v13 }
0x2e25   :  { %v2701_v37 = vpop.xlane.xlu0 %2700 }
0x2e26   :  { %v2703_v38 = vsel %vm2702_vm7, %v2701_v37, 0.0 }
0x2e27   :  { %v2704_v43 = vrot.slane %v2703_v38, 4 }
0x2e29   :  { %v2705_v47 = vadd.f32 %v2704_v43, %v2703_v38 }
0x2e2b   :  { %v2706_v45 = vrot.slane %v2705_v47, 2 }
0x2e2d   :  { %v2707_v41 = vadd.f32 %v2706_v45, %v2705_v47 }
0x2e2f   :  { %v2708_v17 = vrot.slane %v2707_v41, 1 }
0x2e31   :  { %v2709_v0 = vadd.f32 %v2708_v17, %v2707_v41 }
0x2e33   :  { %v2710_v49 = vmul.f32 0.25, %v2709_v0 }
0x2e35   :  { %2712 = vst.msk [vmem:[#allocation3] sm:$0x1] %vm2711_vm8, %v2710_v49 }
0x2e36   :  { %3266 = shalt.err (!%p3263_p4)
}
0x2e37   :  { %s3267_s16 = scalar_lea.hbm %s3863_s10, 16 }
0x2e38   :  { %p3268_p5 = scmp.ne.s32.totalorder %s3863_s10, %s3267_s16  ;;  %p3271_p6 = scmp.lt.u32.totalorder %s3267_s16, %s3863_s10 }
0x2e3a   :  { %p3273_p7 = pnand %p3271_p6, %p3268_p5 }
0x2e3c   :  { %3276 = shalt.err (!%p3273_p7)
}
0x2e3d   :  { %2722 = dma.vmem_to_hbm [thread:$0]  %s2720_s5, 16, %s3863_s10, [#allocation4]  }
0x2e3e   :  { %3277 = dma.done.wait [#allocation4], 16  }
0x2e3f   :  { %3278 = vsyncadd [#allocation4], 4294967280 }
0x2e40   :  { %2726 = vsyncpa [#allocation4], 1 }

</bundles_post_ra>
